<compile_context>
chip_gen: v6e
topology: v6e:2x2x1
jax: 0.10.0
libtpu: 0.0.40
codegen_flags: <defaults>
</compile_context>

<pallas_src>
import functools
import math

import jax
import jax.numpy as jnp
from jax import lax
from jax.experimental import pallas as pl
from jax.experimental.pallas import tpu as pltpu


# --------------------------------------------------------------------------- #
# Pallas kernels
# --------------------------------------------------------------------------- #
def _embed_kernel(xi_ref, wc_ref, xm_ref, wt_ref, pe_ref, o_ref):
    """value_embedding (circular conv1d as im2col matmul) + temporal + positional."""
    v = jnp.dot(xi_ref[...], wc_ref[...], preferred_element_type=jnp.float32)
    t = jnp.dot(xm_ref[...], wt_ref[...], preferred_element_type=jnp.float32)
    o_ref[...] = v + t + pe_ref[...]


def _encoder_layer_kernel(x_ref, wqk_ref, wv_ref, wo_ref, bo_ref,
                          ln1g_ref, ln1b_ref,
                          w1_ref, b1_ref, w2_ref, b2_ref,
                          ln2g_ref, ln2b_ref,
                          o_ref, *, n_heads):
    """Fused: projections -> shared-QK attention -> out proj -> add+LN -> FFN -> add+LN."""
    x = x_ref[...]                                   # (L, D) f32 residual stream
    L, D = x.shape
    Dh = D // n_heads
    xb = x.astype(jnp.bfloat16)

    # --- q/k (shared) and v projections (bf16 MXU, f32 accumulate) -----------
    qk = jnp.dot(xb, wqk_ref[...], preferred_element_type=jnp.float32)   # (L, D)
    v = jnp.dot(xb, wv_ref[...], preferred_element_type=jnp.float32)     # (L, D)

    # --- shared-QK attention, all heads in-register (no HBM transposes) ------
    scale = 1.0 / math.sqrt(Dh)
    ii = lax.broadcasted_iota(jnp.int32, (L, L), 0)
    jj = lax.broadcasted_iota(jnp.int32, (L, L), 1)
    self_mask = ii == jj                              # token cannot attend to itself

    heads_out = []
    for h in range(n_heads):                          # static unroll over heads
        q_h = qk[:, h * Dh:(h + 1) * Dh]              # (L, Dh) f32
        v_h = v[:, h * Dh:(h + 1) * Dh]
        norm = jnp.sqrt(jnp.sum(q_h * q_h, axis=-1, keepdims=True))
        k_h = q_h / jnp.maximum(norm, 1e-12)          # keys L2-normalized (shared QK)
        s = lax.dot_general(q_h.astype(jnp.bfloat16), k_h.astype(jnp.bfloat16),
                            (((1,), (1,)), ((), ())),
                            preferred_element_type=jnp.float32) * scale   # (L, L) f32
        s = jnp.where(self_mask, -5e4, s)
        m = jnp.max(s, axis=-1, keepdims=True)
        p = jnp.exp(s - m)
        denom = jnp.sum(p, axis=-1, keepdims=True)
        p = p * pl.reciprocal(denom, approx=True)     # EUP reciprocal, off VPU path
        heads_out.append(jnp.dot(p.astype(jnp.bfloat16), v_h.astype(jnp.bfloat16),
                                 preferred_element_type=jnp.float32))     # (L, Dh)
    attn = jnp.concatenate(heads_out, axis=-1)        # (L, D)

    attn_out = jnp.dot(attn.astype(jnp.bfloat16), wo_ref[...],
                       preferred_element_type=jnp.float32) + bo_ref[...]

    # --- residual + LayerNorm 1 (f32) ----------------------------------------
    z = x + attn_out
    mean = jnp.mean(z, axis=-1, keepdims=True)
    zc = z - mean
    var = jnp.mean(zc * zc, axis=-1, keepdims=True)
    x1 = zc * lax.rsqrt(var + 1e-5) * ln1g_ref[...] + ln1b_ref[...]

    # --- FFN: conv1 (k=1) -> relu -> conv2 (k=1) ------------------------------
    h1 = jnp.dot(x1.astype(jnp.bfloat16), w1_ref[...],
                 preferred_element_type=jnp.float32) + b1_ref[...]
    h1 = jnp.maximum(h1, 0.0)
    y = jnp.dot(h1.astype(jnp.bfloat16), w2_ref[...],
                preferred_element_type=jnp.float32) + b2_ref[...]

    # --- residual + LayerNorm 2 (f32) ----------------------------------------
    z2 = x1 + y
    mean2 = jnp.mean(z2, axis=-1, keepdims=True)
    zc2 = z2 - mean2
    var2 = jnp.mean(zc2 * zc2, axis=-1, keepdims=True)
    o_ref[...] = zc2 * lax.rsqrt(var2 + 1e-5) * ln2g_ref[...] + ln2b_ref[...]


def _final_norm_proj_kernel(x_ref, g_ref, b_ref, wp_ref, bp_ref, o_ref):
    """Fused final encoder LayerNorm + output projection."""
    x = x_ref[...]
    mean = jnp.mean(x, axis=-1, keepdims=True)
    xc = x - mean
    var = jnp.mean(xc * xc, axis=-1, keepdims=True)
    xn = xc * lax.rsqrt(var + 1e-5) * g_ref[...] + b_ref[...]
    o_ref[...] = jnp.dot(xn.astype(jnp.bfloat16), wp_ref[...],
                         preferred_element_type=jnp.float32) + bp_ref[...]


# --------------------------------------------------------------------------- #
# Kernel wrappers (grid over batch, parallel semantics)
# --------------------------------------------------------------------------- #
_PARALLEL = pltpu.CompilerParams(dimension_semantics=("parallel",))


def fused_embedding(x_im2col, w_conv, x_mark, w_temp, pe):
    B, L, Ki = x_im2col.shape
    Km = x_mark.shape[2]
    D = w_conv.shape[1]
    return pl.pallas_call(
        _embed_kernel,
        out_shape=jax.ShapeDtypeStruct((B, L, D), jnp.float32),
        grid=(B,),
        in_specs=[
            pl.BlockSpec((None, L, Ki), lambda b: (b, 0, 0)),
            pl.BlockSpec((Ki, D), lambda b: (0, 0)),
            pl.BlockSpec((None, L, Km), lambda b: (b, 0, 0)),
            pl.BlockSpec((Km, D), lambda b: (0, 0)),
            pl.BlockSpec((L, D), lambda b: (0, 0)),    # pe re-used for every batch
        ],
        out_specs=pl.BlockSpec((None, L, D), lambda b: (b, 0, 0)),
        compiler_params=_PARALLEL,
    )(x_im2col, w_conv, x_mark, w_temp, pe)


def encoder_layer(enc, lp, n_heads):
    B, L, D = enc.shape
    F = lp["w1"].shape[1]
    kern = functools.partial(_encoder_layer_kernel, n_heads=n_heads)
    w = lambda shape: pl.BlockSpec(shape, lambda b: (0, 0))
    return pl.pallas_call(
        kern,
        out_shape=jax.ShapeDtypeStruct((B, L, D), jnp.float32),
        grid=(B,),
        in_specs=[
            pl.BlockSpec((None, L, D), lambda b: (b, 0, 0)),      # x
            w((D, D)), w((D, D)), w((D, D)), w((1, D)),           # w_qk, w_v, w_o, b_o
            w((1, D)), w((1, D)),                                 # ln1 gamma, beta
            w((D, F)), w((1, F)), w((F, D)), w((1, D)),           # w1, b1, w2, b2
            w((1, D)), w((1, D)),                                 # ln2 gamma, beta
        ],
        out_specs=pl.BlockSpec((None, L, D), lambda b: (b, 0, 0)),
        compiler_params=_PARALLEL,
    )(enc,
      lp["w_qk"], lp["w_v"], lp["w_o"], lp["b_o"].reshape(1, D),
      lp["ln1_g"].reshape(1, D), lp["ln1_b"].reshape(1, D),
      lp["w1"], lp["b1"].reshape(1, F), lp["w2"], lp["b2"].reshape(1, D),
      lp["ln2_g"].reshape(1, D), lp["ln2_b"].reshape(1, D))


def final_norm_proj(enc, gamma, beta, w_proj, b_proj):
    B, L, D = enc.shape
    Cout = w_proj.shape[1]
    return pl.pallas_call(
        _final_norm_proj_kernel,
        out_shape=jax.ShapeDtypeStruct((B, L, Cout), jnp.float32),
        grid=(B,),
        in_specs=[
            pl.BlockSpec((None, L, D), lambda b: (b, 0, 0)),
            pl.BlockSpec((1, D), lambda b: (0, 0)),
            pl.BlockSpec((1, D), lambda b: (0, 0)),
            pl.BlockSpec((D, Cout), lambda b: (0, 0)),
            pl.BlockSpec((1, Cout), lambda b: (0, 0)),
        ],
        out_specs=pl.BlockSpec((None, L, Cout), lambda b: (b, 0, 0)),
        compiler_params=_PARALLEL,
    )(enc, gamma.reshape(1, D), beta.reshape(1, D), w_proj, b_proj.reshape(1, Cout))


# --------------------------------------------------------------------------- #
# Model glue
# --------------------------------------------------------------------------- #
def positional_encoding(L, D):
    pos = jnp.arange(L, dtype=jnp.float32)[:, None]
    div = jnp.exp(jnp.arange(0, D, 2, dtype=jnp.float32) * (-math.log(10000.0) / D))
    pe = jnp.zeros((L, D), dtype=jnp.float32)
    pe = pe.at[:, 0::2].set(jnp.sin(pos * div))
    pe = pe.at[:, 1::2].set(jnp.cos(pos * div))
    return pe


def init_params(key, cfg):
    D, F = cfg["d_model"], cfg["d_ff"]
    Cin, Cmark, Cout = cfg["enc_in"], cfg["mark_in"], cfg["c_out"]

    def dense(k, shape):                 # matmul weights stored in bf16
        fan_in = shape[0]
        w = jax.random.normal(k, shape, jnp.float32) / math.sqrt(fan_in)
        return w.astype(jnp.bfloat16)

    keys = jax.random.split(key, 4 + cfg["e_layers"])
    params = {
        # TODO(synk): im2col column order [x_{t-1}|x_t|x_{t+1}] must match the
        # (out, in, k) flattening of a pretrained Conv1d weight when loading real weights.
        "w_conv": dense(keys[0], (3 * Cin, D)),    # Conv1d(Cin, D, k=3, circular, no bias)
        "w_temp": dense(keys[1], (Cmark, D)),      # TimeFeatureEmbedding (no bias)
        "w_proj": dense(keys[2], (D, Cout)),
        "b_proj": jnp.zeros((Cout,), jnp.float32),
        "norm_g": jnp.ones((D,), jnp.float32),
        "norm_b": jnp.zeros((D,), jnp.float32),
        "layers": [],
    }
    for li in range(cfg["e_layers"]):
        lk = jax.random.split(keys[4 + li], 6)
        params["layers"].append({
            "w_qk": dense(lk[0], (D, D)),          # LSHSelfAttention.to_qk (no bias)
            "w_v":  dense(lk[1], (D, D)),          # LSHSelfAttention.to_v  (no bias)
            "w_o":  dense(lk[2], (D, D)),          # LSHSelfAttention.to_out
            "b_o":  jnp.zeros((D,), jnp.float32),
            "ln1_g": jnp.ones((D,), jnp.float32), "ln1_b": jnp.zeros((D,), jnp.float32),
            "w1": dense(lk[3], (D, F)), "b1": jnp.zeros((F,), jnp.float32),
            "w2": dense(lk[4], (F, D)), "b2": jnp.zeros((D,), jnp.float32),
            "ln2_g": jnp.ones((D,), jnp.float32), "ln2_b": jnp.zeros((D,), jnp.float32),
        })
    return params


def reformer_forward(params, cfg, x_enc, x_mark_enc, x_dec, x_mark_dec):
    pred_len = cfg["pred_len"]
    x = jnp.concatenate([x_enc, x_dec[:, -pred_len:, :]], axis=1)            # (B, L, Cin)
    xm = jnp.concatenate([x_mark_enc, x_mark_dec[:, -pred_len:, :]], axis=1)
    B, L, Cin = x.shape
    D, H = cfg["d_model"], cfg["n_heads"]

    # --- DataEmbedding --------------------------------------------------------
    # circular conv1d (k=3, pad=1) as im2col: [x_{t-1} | x_t | x_{t+1}]
    x_im2col = jnp.concatenate(
        [jnp.roll(x, 1, axis=1), x, jnp.roll(x, -1, axis=1)], axis=-1
    ).astype(jnp.bfloat16)                                                   # (B, L, 3Cin)
    pe = positional_encoding(L, D)                                           # (L, D), shared
    enc = fused_embedding(x_im2col, params["w_conv"],
                          xm.astype(jnp.bfloat16), params["w_temp"], pe)     # (B, L, D)

    # --- Encoder layers (one fused Pallas kernel each) ------------------------
    for lp in params["layers"]:
        enc = encoder_layer(enc, lp, H)

    # --- final LayerNorm + projection, slice last pred_len --------------------
    out = final_norm_proj(enc, params["norm_g"], params["norm_b"],
                          params["w_proj"], params["b_proj"])                # (B, L, Cout)
    return out[:, -pred_len:, :]


# --------------------------------------------------------------------------- #
if __name__ == "__main__":
    cfg = dict(
        pred_len=8, seq_len=8, label_len=4,
        enc_in=4, c_out=4, mark_in=4,          # freq='h' -> 4 timeF features
        d_model=32, n_heads=4, d_ff=64, e_layers=2,
        bucket_size=4, n_hashes=2,             # LSH hyper-params (see TODO above)
    )
    key = jax.random.PRNGKey(0)
    k_p, k1, k2, k3, k4 = jax.random.split(key, 5)
    params = init_params(k_p, cfg)

    B = 2
    x_enc = jax.random.normal(k1, (B, cfg["seq_len"], cfg["enc_in"]), jnp.float32)
    x_mark_enc = jax.random.normal(k2, (B, cfg["seq_len"], cfg["mark_in"]), jnp.float32)
    dec_len = cfg["label_len"] + cfg["pred_len"]
    x_dec = jax.random.normal(k3, (B, dec_len, cfg["enc_in"]), jnp.float32)
    x_mark_dec = jax.random.normal(k4, (B, dec_len, cfg["mark_in"]), jnp.float32)

    fwd = jax.jit(lambda a, b_, c, d: reformer_forward(params, cfg, a, b_, c, d))
    out = fwd(x_enc, x_mark_enc, x_dec, x_mark_dec)
    out = jax.block_until_ready(out)
    assert out.shape == (B, cfg["pred_len"], cfg["c_out"])
    assert bool(jnp.all(jnp.isfinite(out)))
    print("KERNEL_OK")
</pallas_src>

<mosaic_0001>
module attributes {stable_mosaic.version = 11 : i64} {
  func.func @_embed_kernel(%arg0: i32, %arg1: memref<1x16x12xbf16, #tpu.memory_space<vmem>>, %arg2: memref<12x32xbf16, #tpu.memory_space<vmem>>, %arg3: memref<1x16x4xbf16, #tpu.memory_space<vmem>>, %arg4: memref<4x32xbf16, #tpu.memory_space<vmem>>, %arg5: memref<16x32xf32, #tpu.memory_space<vmem>>, %arg6: memref<1x16x32xf32, #tpu.memory_space<vmem>>) attributes {dimension_semantics = [#tpu.dimension_semantics<parallel>], iteration_bounds = array<i64: 2>, scalar_prefetch = 0 : i64, scratch_operands = 0 : i64, tpu.core_type = #tpu.core_type<tc>, window_params = [{transform_indices = @transform_0, window_bounds = array<i64: 1, 16, 12>}, {pipeline_mode = #tpu.pipeline_mode<synchronous>, transform_indices = @transform_1, window_bounds = array<i64: 12, 32>}, {transform_indices = @transform_2, window_bounds = array<i64: 1, 16, 4>}, {pipeline_mode = #tpu.pipeline_mode<synchronous>, transform_indices = @transform_3, window_bounds = array<i64: 4, 32>}, {pipeline_mode = #tpu.pipeline_mode<synchronous>, transform_indices = @transform_4, window_bounds = array<i64: 16, 32>}, {transform_indices = @transform_5, window_bounds = array<i64: 1, 16, 32>}]} {
    %c0 = arith.constant 0 : index
    %c0_0 = arith.constant 0 : index
    %c0_1 = arith.constant 0 : index
    %0 = vector.load %arg1[%c0, %c0_0, %c0_1] : memref<1x16x12xbf16, #tpu.memory_space<vmem>>, vector<1x16x12xbf16>
    %1 = vector.shape_cast %0 : vector<1x16x12xbf16> to vector<16x12xbf16>
    %c0_2 = arith.constant 0 : index
    %c0_3 = arith.constant 0 : index
    %2 = vector.load %arg2[%c0_2, %c0_3] : memref<12x32xbf16, #tpu.memory_space<vmem>>, vector<12x32xbf16>
    %cst = arith.constant dense<0.000000e+00> : vector<16x32xf32>
    %3 = tpu.matmul %1, %2, %cst {dimension_numbers = #tpu.dot_dimension_numbers<[1], [0], [0], [1], [0, 0, 1, 1], [], []>} : vector<16x12xbf16>, vector<12x32xbf16>, vector<16x32xf32> -> vector<16x32xf32>
    %c0_4 = arith.constant 0 : index
    %c0_5 = arith.constant 0 : index
    %c0_6 = arith.constant 0 : index
    %4 = vector.load %arg3[%c0_4, %c0_5, %c0_6] : memref<1x16x4xbf16, #tpu.memory_space<vmem>>, vector<1x16x4xbf16>
    %5 = vector.shape_cast %4 : vector<1x16x4xbf16> to vector<16x4xbf16>
    %c0_7 = arith.constant 0 : index
    %c0_8 = arith.constant 0 : index
    %6 = vector.load %arg4[%c0_7, %c0_8] : memref<4x32xbf16, #tpu.memory_space<vmem>>, vector<4x32xbf16>
    %cst_9 = arith.constant dense<0.000000e+00> : vector<16x32xf32>
    %7 = tpu.matmul %5, %6, %cst_9 {dimension_numbers = #tpu.dot_dimension_numbers<[1], [0], [0], [1], [0, 0, 1, 1], [], []>} : vector<16x4xbf16>, vector<4x32xbf16>, vector<16x32xf32> -> vector<16x32xf32>
    %8 = arith.addf %3, %7 : vector<16x32xf32>
    %c0_10 = arith.constant 0 : index
    %c0_11 = arith.constant 0 : index
    %9 = vector.load %arg5[%c0_10, %c0_11] : memref<16x32xf32, #tpu.memory_space<vmem>>, vector<16x32xf32>
    %10 = arith.addf %8, %9 : vector<16x32xf32>
    %c0_12 = arith.constant 0 : index
    %c0_13 = arith.constant 0 : index
    %c0_14 = arith.constant 0 : index
    %11 = vector.load %arg6[%c0_12, %c0_13, %c0_14] : memref<1x16x32xf32, #tpu.memory_space<vmem>>, vector<1x16x32xf32>
    %12 = vector.shape_cast %11 : vector<1x16x32xf32> to vector<16x32xf32>
    %13 = vector.shape_cast %10 : vector<16x32xf32> to vector<1x16x32xf32>
    tpu.vector_store %arg6[%c0_12, %c0_13, %c0_14], %13 {strides = array<i32>} : memref<1x16x32xf32, #tpu.memory_space<vmem>>, vector<1x16x32xf32>,
    return
  }
  func.func @transform_0(%arg0: i32) -> (i32, i32, i32) {
    %c0_i32 = arith.constant 0 : i32
    %c0_i32_0 = arith.constant 0 : i32
    %c0_i32_1 = arith.constant 0 : i32
    return %arg0, %c0_i32, %c0_i32_0 : i32, i32, i32
  }
  func.func @transform_1(%arg0: i32) -> (i32, i32) {
    %c0_i32 = arith.constant 0 : i32
    %c0_i32_0 = arith.constant 0 : i32
    %c0_i32_1 = arith.constant 0 : i32
    return %c0_i32, %c0_i32_0 : i32, i32
  }
  func.func @transform_2(%arg0: i32) -> (i32, i32, i32) {
    %c0_i32 = arith.constant 0 : i32
    %c0_i32_0 = arith.constant 0 : i32
    %c0_i32_1 = arith.constant 0 : i32
    return %arg0, %c0_i32, %c0_i32_0 : i32, i32, i32
  }
  func.func @transform_3(%arg0: i32) -> (i32, i32) {
    %c0_i32 = arith.constant 0 : i32
    %c0_i32_0 = arith.constant 0 : i32
    %c0_i32_1 = arith.constant 0 : i32
    return %c0_i32, %c0_i32_0 : i32, i32
  }
  func.func @transform_4(%arg0: i32) -> (i32, i32) {
    %c0_i32 = arith.constant 0 : i32
    %c0_i32_0 = arith.constant 0 : i32
    %c0_i32_1 = arith.constant 0 : i32
    return %c0_i32, %c0_i32_0 : i32, i32
  }
  func.func @transform_5(%arg0: i32) -> (i32, i32, i32) {
    %c0_i32 = arith.constant 0 : i32
    %c0_i32_0 = arith.constant 0 : i32
    %c0_i32_1 = arith.constant 0 : i32
    return %arg0, %c0_i32, %c0_i32_0 : i32, i32, i32
  }
}

module attributes {stable_mosaic.version = 11 : i64} {
  func.func @_encoder_layer_kernel(%arg0: i32, %arg1: memref<1x16x32xf32, #tpu.memory_space<vmem>>, %arg2: memref<32x32xbf16, #tpu.memory_space<vmem>>, %arg3: memref<32x32xbf16, #tpu.memory_space<vmem>>, %arg4: memref<32x32xbf16, #tpu.memory_space<vmem>>, %arg5: memref<1x32xf32, #tpu.memory_space<vmem>>, %arg6: memref<1x32xf32, #tpu.memory_space<vmem>>, %arg7: memref<1x32xf32, #tpu.memory_space<vmem>>, %arg8: memref<32x64xbf16, #tpu.memory_space<vmem>>, %arg9: memref<1x64xf32, #tpu.memory_space<vmem>>, %arg10: memref<64x32xbf16, #tpu.memory_space<vmem>>, %arg11: memref<1x32xf32, #tpu.memory_space<vmem>>, %arg12: memref<1x32xf32, #tpu.memory_space<vmem>>, %arg13: memref<1x32xf32, #tpu.memory_space<vmem>>, %arg14: memref<1x16x32xf32, #tpu.memory_space<vmem>>) attributes {dimension_semantics = [#tpu.dimension_semantics<parallel>], iteration_bounds = array<i64: 2>, scalar_prefetch = 0 : i64, scratch_operands = 0 : i64, tpu.core_type = #tpu.core_type<tc>, window_params = [{transform_indices = @transform_0, window_bounds = array<i64: 1, 16, 32>}, {pipeline_mode = #tpu.pipeline_mode<synchronous>, transform_indices = @transform_1, window_bounds = array<i64: 32, 32>}, {pipeline_mode = #tpu.pipeline_mode<synchronous>, transform_indices = @transform_2, window_bounds = array<i64: 32, 32>}, {pipeline_mode = #tpu.pipeline_mode<synchronous>, transform_indices = @transform_3, window_bounds = array<i64: 32, 32>}, {pipeline_mode = #tpu.pipeline_mode<synchronous>, transform_indices = @transform_4, window_bounds = array<i64: 1, 32>}, {pipeline_mode = #tpu.pipeline_mode<synchronous>, transform_indices = @transform_5, window_bounds = array<i64: 1, 32>}, {pipeline_mode = #tpu.pipeline_mode<synchronous>, transform_indices = @transform_6, window_bounds = array<i64: 1, 32>}, {pipeline_mode = #tpu.pipeline_mode<synchronous>, transform_indices = @transform_7, window_bounds = array<i64: 32, 64>}, {pipeline_mode = #tpu.pipeline_mode<synchronous>, transform_indices = @transform_8, window_bounds = array<i64: 1, 64>}, {pipeline_mode = #tpu.pipeline_mode<synchronous>, transform_indices = @transform_9, window_bounds = array<i64: 64, 32>}, {pipeline_mode = #tpu.pipeline_mode<synchronous>, transform_indices = @transform_10, window_bounds = array<i64: 1, 32>}, {pipeline_mode = #tpu.pipeline_mode<synchronous>, transform_indices = @transform_11, window_bounds = array<i64: 1, 32>}, {pipeline_mode = #tpu.pipeline_mode<synchronous>, transform_indices = @transform_12, window_bounds = array<i64: 1, 32>}, {transform_indices = @transform_13, window_bounds = array<i64: 1, 16, 32>}]} {
    %c0 = arith.constant 0 : index
    %c0_0 = arith.constant 0 : index
    %c0_1 = arith.constant 0 : index
    %0 = vector.load %arg1[%c0, %c0_0, %c0_1] : memref<1x16x32xf32, #tpu.memory_space<vmem>>, vector<1x16x32xf32>
    %1 = vector.shape_cast %0 : vector<1x16x32xf32> to vector<16x32xf32>
    %2 = arith.truncf %1 : vector<16x32xf32> to vector<16x32xbf16>
    %c0_2 = arith.constant 0 : index
    %c0_3 = arith.constant 0 : index
    %3 = vector.load %arg2[%c0_2, %c0_3] : memref<32x32xbf16, #tpu.memory_space<vmem>>, vector<32x32xbf16>
    %cst = arith.constant dense<0.000000e+00> : vector<16x32xf32>
    %4 = tpu.matmul %2, %3, %cst {dimension_numbers = #tpu.dot_dimension_numbers<[1], [0], [0], [1], [0, 0, 1, 1], [], []>} : vector<16x32xbf16>, vector<32x32xbf16>, vector<16x32xf32> -> vector<16x32xf32>
    %c0_4 = arith.constant 0 : index
    %c0_5 = arith.constant 0 : index
    %5 = vector.load %arg3[%c0_4, %c0_5] : memref<32x32xbf16, #tpu.memory_space<vmem>>, vector<32x32xbf16>
    %cst_6 = arith.constant dense<0.000000e+00> : vector<16x32xf32>
    %6 = tpu.matmul %2, %5, %cst_6 {dimension_numbers = #tpu.dot_dimension_numbers<[1], [0], [0], [1], [0, 0, 1, 1], [], []>} : vector<16x32xbf16>, vector<32x32xbf16>, vector<16x32xf32> -> vector<16x32xf32>
    %7 = tpu.iota {dimensions = array<i32: 0>} : vector<16x16xi32>
    %8 = tpu.iota {dimensions = array<i32: 1>} : vector<16x16xi32>
    %9 = arith.cmpi eq, %7, %8 : vector<16x16xi32>
    %10 = vector.extract_strided_slice %4 {offsets = [0, 0], sizes = [16, 8], strides = [1, 1]} : vector<16x32xf32> to vector<16x8xf32>
    %11 = vector.extract_strided_slice %6 {offsets = [0, 0], sizes = [16, 8], strides = [1, 1]} : vector<16x32xf32> to vector<16x8xf32>
    %12 = arith.mulf %10, %10 : vector<16x8xf32>
    %cst_7 = arith.constant dense<0.000000e+00> : vector<16xf32>
    %13 = vector.multi_reduction <add>, %12, %cst_7 [1] : vector<16x8xf32> to vector<16xf32>
    %14 = vector.shape_cast %13 : vector<16xf32> to vector<16x1xf32>
    %15 = math.sqrt %14 : vector<16x1xf32>
    %cst_8 = arith.constant 9.99999996E-13 : f32
    %16 = vector.broadcast %cst_8 : f32 to vector<16x1xf32>
    %17 = arith.maximumf %15, %16 : vector<16x1xf32>
    %18 = vector.broadcast %17 : vector<16x1xf32> to vector<16x8xf32>
    %19 = arith.divf %10, %18 : vector<16x8xf32>
    %20 = arith.truncf %10 : vector<16x8xf32> to vector<16x8xbf16>
    %21 = arith.truncf %19 : vector<16x8xf32> to vector<16x8xbf16>
    %cst_9 = arith.constant dense<0.000000e+00> : vector<16x16xf32>
    %22 = tpu.matmul %20, %21, %cst_9 {dimension_numbers = #tpu.dot_dimension_numbers<[1], [1], [0], [0], [0, 0, 1, 0], [], []>} : vector<16x8xbf16>, vector<16x8xbf16>, vector<16x16xf32> -> vector<16x16xf32>
    %cst_10 = arith.constant 0.353553385 : f32
    %23 = vector.broadcast %cst_10 : f32 to vector<16x16xf32>
    %24 = arith.mulf %22, %23 : vector<16x16xf32>
    %cst_11 = arith.constant -5.000000e+04 : f32
    %25 = vector.broadcast %cst_11 : f32 to vector<16x16xf32>
    %26 = arith.select %9, %25, %24 : vector<16x16xi1>, vector<16x16xf32>
    %cst_12 = arith.constant dense<0xFF800000> : vector<16xf32>
    %27 = vector.multi_reduction <maximumf>, %26, %cst_12 [1] : vector<16x16xf32> to vector<16xf32>
    %28 = vector.shape_cast %27 : vector<16xf32> to vector<16x1xf32>
    %29 = vector.broadcast %28 : vector<16x1xf32> to vector<16x16xf32>
    %30 = arith.subf %26, %29 : vector<16x16xf32>
    %31 = math.exp %30 : vector<16x16xf32>
    %cst_13 = arith.constant dense<0.000000e+00> : vector<16xf32>
    %32 = vector.multi_reduction <add>, %31, %cst_13 [1] : vector<16x16xf32> to vector<16xf32>
    %33 = vector.shape_cast %32 : vector<16xf32> to vector<16x1xf32>
    %34 = tpu.reciprocal %33 {approx = true} : vector<16x1xf32> -> vector<16x1xf32>
    %35 = vector.broadcast %34 : vector<16x1xf32> to vector<16x16xf32>
    %36 = arith.mulf %31, %35 : vector<16x16xf32>
    %37 = arith.truncf %36 : vector<16x16xf32> to vector<16x16xbf16>
    %38 = arith.truncf %11 : vector<16x8xf32> to vector<16x8xbf16>
    %cst_14 = arith.constant dense<0.000000e+00> : vector<16x8xf32>
    %39 = tpu.matmul %37, %38, %cst_14 {dimension_numbers = #tpu.dot_dimension_numbers<[1], [0], [0], [1], [0, 0, 1, 1], [], []>} : vector<16x16xbf16>, vector<16x8xbf16>, vector<16x8xf32> -> vector<16x8xf32>
    %40 = vector.extract_strided_slice %4 {offsets = [0, 8], sizes = [16, 8], strides = [1, 1]} : vector<16x32xf32> to vector<16x8xf32>
    %41 = vector.extract_strided_slice %6 {offsets = [0, 8], sizes = [16, 8], strides = [1, 1]} : vector<16x32xf32> to vector<16x8xf32>
    %42 = arith.mulf %40, %40 : vector<16x8xf32>
    %cst_15 = arith.constant dense<0.000000e+00> : vector<16xf32>
    %43 = vector.multi_reduction <add>, %42, %cst_15 [1] : vector<16x8xf32> to vector<16xf32>
    %44 = vector.shape_cast %43 : vector<16xf32> to vector<16x1xf32>
    %45 = math.sqrt %44 : vector<16x1xf32>
    %cst_16 = arith.constant 9.99999996E-13 : f32
    %46 = vector.broadcast %cst_16 : f32 to vector<16x1xf32>
    %47 = arith.maximumf %45, %46 : vector<16x1xf32>
    %48 = vector.broadcast %47 : vector<16x1xf32> to vector<16x8xf32>
    %49 = arith.divf %40, %48 : vector<16x8xf32>
    %50 = arith.truncf %40 : vector<16x8xf32> to vector<16x8xbf16>
    %51 = arith.truncf %49 : vector<16x8xf32> to vector<16x8xbf16>
    %cst_17 = arith.constant dense<0.000000e+00> : vector<16x16xf32>
    %52 = tpu.matmul %50, %51, %cst_17 {dimension_numbers = #tpu.dot_dimension_numbers<[1], [1], [0], [0], [0, 0, 1, 0], [], []>} : vector<16x8xbf16>, vector<16x8xbf16>, vector<16x16xf32> -> vector<16x16xf32>
    %cst_18 = arith.constant 0.353553385 : f32
    %53 = vector.broadcast %cst_18 : f32 to vector<16x16xf32>
    %54 = arith.mulf %52, %53 : vector<16x16xf32>
    %cst_19 = arith.constant -5.000000e+04 : f32
    %55 = vector.broadcast %cst_19 : f32 to vector<16x16xf32>
    %56 = arith.select %9, %55, %54 : vector<16x16xi1>, vector<16x16xf32>
    %cst_20 = arith.constant dense<0xFF800000> : vector<16xf32>
    %57 = vector.multi_reduction <maximumf>, %56, %cst_20 [1] : vector<16x16xf32> to vector<16xf32>
    %58 = vector.shape_cast %57 : vector<16xf32> to vector<16x1xf32>
    %59 = vector.broadcast %58 : vector<16x1xf32> to vector<16x16xf32>
    %60 = arith.subf %56, %59 : vector<16x16xf32>
    %61 = math.exp %60 : vector<16x16xf32>
    %cst_21 = arith.constant dense<0.000000e+00> : vector<16xf32>
    %62 = vector.multi_reduction <add>, %61, %cst_21 [1] : vector<16x16xf32> to vector<16xf32>
    %63 = vector.shape_cast %62 : vector<16xf32> to vector<16x1xf32>
    %64 = tpu.reciprocal %63 {approx = true} : vector<16x1xf32> -> vector<16x1xf32>
    %65 = vector.broadcast %64 : vector<16x1xf32> to vector<16x16xf32>
    %66 = arith.mulf %61, %65 : vector<16x16xf32>
    %67 = arith.truncf %66 : vector<16x16xf32> to vector<16x16xbf16>
    %68 = arith.truncf %41 : vector<16x8xf32> to vector<16x8xbf16>
    %cst_22 = arith.constant dense<0.000000e+00> : vector<16x8xf32>
    %69 = tpu.matmul %67, %68, %cst_22 {dimension_numbers = #tpu.dot_dimension_numbers<[1], [0], [0], [1], [0, 0, 1, 1], [], []>} : vector<16x16xbf16>, vector<16x8xbf16>, vector<16x8xf32> -> vector<16x8xf32>
    %70 = vector.extract_strided_slice %4 {offsets = [0, 16], sizes = [16, 8], strides = [1, 1]} : vector<16x32xf32> to vector<16x8xf32>
    %71 = vector.extract_strided_slice %6 {offsets = [0, 16], sizes = [16, 8], strides = [1, 1]} : vector<16x32xf32> to vector<16x8xf32>
    %72 = arith.mulf %70, %70 : vector<16x8xf32>
    %cst_23 = arith.constant dense<0.000000e+00> : vector<16xf32>
    %73 = vector.multi_reduction <add>, %72, %cst_23 [1] : vector<16x8xf32> to vector<16xf32>
    %74 = vector.shape_cast %73 : vector<16xf32> to vector<16x1xf32>
    %75 = math.sqrt %74 : vector<16x1xf32>
    %cst_24 = arith.constant 9.99999996E-13 : f32
    %76 = vector.broadcast %cst_24 : f32 to vector<16x1xf32>
    %77 = arith.maximumf %75, %76 : vector<16x1xf32>
    %78 = vector.broadcast %77 : vector<16x1xf32> to vector<16x8xf32>
    %79 = arith.divf %70, %78 : vector<16x8xf32>
    %80 = arith.truncf %70 : vector<16x8xf32> to vector<16x8xbf16>
    %81 = arith.truncf %79 : vector<16x8xf32> to vector<16x8xbf16>
    %cst_25 = arith.constant dense<0.000000e+00> : vector<16x16xf32>
    %82 = tpu.matmul %80, %81, %cst_25 {dimension_numbers = #tpu.dot_dimension_numbers<[1], [1], [0], [0], [0, 0, 1, 0], [], []>} : vector<16x8xbf16>, vector<16x8xbf16>, vector<16x16xf32> -> vector<16x16xf32>
    %cst_26 = arith.constant 0.353553385 : f32
    %83 = vector.broadcast %cst_26 : f32 to vector<16x16xf32>
    %84 = arith.mulf %82, %83 : vector<16x16xf32>
    %cst_27 = arith.constant -5.000000e+04 : f32
    %85 = vector.broadcast %cst_27 : f32 to vector<16x16xf32>
    %86 = arith.select %9, %85, %84 : vector<16x16xi1>, vector<16x16xf32>
    %cst_28 = arith.constant dense<0xFF800000> : vector<16xf32>
    %87 = vector.multi_reduction <maximumf>, %86, %cst_28 [1] : vector<16x16xf32> to vector<16xf32>
    %88 = vector.shape_cast %87 : vector<16xf32> to vector<16x1xf32>
    %89 = vector.broadcast %88 : vector<16x1xf32> to vector<16x16xf32>
    %90 = arith.subf %86, %89 : vector<16x16xf32>
    %91 = math.exp %90 : vector<16x16xf32>
    %cst_29 = arith.constant dense<0.000000e+00> : vector<16xf32>
    %92 = vector.multi_reduction <add>, %91, %cst_29 [1] : vector<16x16xf32> to vector<16xf32>
    %93 = vector.shape_cast %92 : vector<16xf32> to vector<16x1xf32>
    %94 = tpu.reciprocal %93 {approx = true} : vector<16x1xf32> -> vector<16x1xf32>
    %95 = vector.broadcast %94 : vector<16x1xf32> to vector<16x16xf32>
    %96 = arith.mulf %91, %95 : vector<16x16xf32>
    %97 = arith.truncf %96 : vector<16x16xf32> to vector<16x16xbf16>
    %98 = arith.truncf %71 : vector<16x8xf32> to vector<16x8xbf16>
    %cst_30 = arith.constant dense<0.000000e+00> : vector<16x8xf32>
    %99 = tpu.matmul %97, %98, %cst_30 {dimension_numbers = #tpu.dot_dimension_numbers<[1], [0], [0], [1], [0, 0, 1, 1], [], []>} : vector<16x16xbf16>, vector<16x8xbf16>, vector<16x8xf32> -> vector<16x8xf32>
    %100 = vector.extract_strided_slice %4 {offsets = [0, 24], sizes = [16, 8], strides = [1, 1]} : vector<16x32xf32> to vector<16x8xf32>
    %101 = vector.extract_strided_slice %6 {offsets = [0, 24], sizes = [16, 8], strides = [1, 1]} : vector<16x32xf32> to vector<16x8xf32>
    %102 = arith.mulf %100, %100 : vector<16x8xf32>
    %cst_31 = arith.constant dense<0.000000e+00> : vector<16xf32>
    %103 = vector.multi_reduction <add>, %102, %cst_31 [1] : vector<16x8xf32> to vector<16xf32>
    %104 = vector.shape_cast %103 : vector<16xf32> to vector<16x1xf32>
    %105 = math.sqrt %104 : vector<16x1xf32>
    %cst_32 = arith.constant 9.99999996E-13 : f32
    %106 = vector.broadcast %cst_32 : f32 to vector<16x1xf32>
    %107 = arith.maximumf %105, %106 : vector<16x1xf32>
    %108 = vector.broadcast %107 : vector<16x1xf32> to vector<16x8xf32>
    %109 = arith.divf %100, %108 : vector<16x8xf32>
    %110 = arith.truncf %100 : vector<16x8xf32> to vector<16x8xbf16>
    %111 = arith.truncf %109 : vector<16x8xf32> to vector<16x8xbf16>
    %cst_33 = arith.constant dense<0.000000e+00> : vector<16x16xf32>
    %112 = tpu.matmul %110, %111, %cst_33 {dimension_numbers = #tpu.dot_dimension_numbers<[1], [1], [0], [0], [0, 0, 1, 0], [], []>} : vector<16x8xbf16>, vector<16x8xbf16>, vector<16x16xf32> -> vector<16x16xf32>
    %cst_34 = arith.constant 0.353553385 : f32
    %113 = vector.broadcast %cst_34 : f32 to vector<16x16xf32>
    %114 = arith.mulf %112, %113 : vector<16x16xf32>
    %cst_35 = arith.constant -5.000000e+04 : f32
    %115 = vector.broadcast %cst_35 : f32 to vector<16x16xf32>
    %116 = arith.select %9, %115, %114 : vector<16x16xi1>, vector<16x16xf32>
    %cst_36 = arith.constant dense<0xFF800000> : vector<16xf32>
    %117 = vector.multi_reduction <maximumf>, %116, %cst_36 [1] : vector<16x16xf32> to vector<16xf32>
    %118 = vector.shape_cast %117 : vector<16xf32> to vector<16x1xf32>
    %119 = vector.broadcast %118 : vector<16x1xf32> to vector<16x16xf32>
    %120 = arith.subf %116, %119 : vector<16x16xf32>
    %121 = math.exp %120 : vector<16x16xf32>
    %cst_37 = arith.constant dense<0.000000e+00> : vector<16xf32>
    %122 = vector.multi_reduction <add>, %121, %cst_37 [1] : vector<16x16xf32> to vector<16xf32>
    %123 = vector.shape_cast %122 : vector<16xf32> to vector<16x1xf32>
    %124 = tpu.reciprocal %123 {approx = true} : vector<16x1xf32> -> vector<16x1xf32>
    %125 = vector.broadcast %124 : vector<16x1xf32> to vector<16x16xf32>
    %126 = arith.mulf %121, %125 : vector<16x16xf32>
    %127 = arith.truncf %126 : vector<16x16xf32> to vector<16x16xbf16>
    %128 = arith.truncf %101 : vector<16x8xf32> to vector<16x8xbf16>
    %cst_38 = arith.constant dense<0.000000e+00> : vector<16x8xf32>
    %129 = tpu.matmul %127, %128, %cst_38 {dimension_numbers = #tpu.dot_dimension_numbers<[1], [0], [0], [1], [0, 0, 1, 1], [], []>} : vector<16x16xbf16>, vector<16x8xbf16>, vector<16x8xf32> -> vector<16x8xf32>
    %130 = tpu.concatenate %39, %69, %99, %129 in 1 : vector<16x8xf32>, vector<16x8xf32>, vector<16x8xf32>, vector<16x8xf32> -> vector<16x32xf32>
    %131 = arith.truncf %130 : vector<16x32xf32> to vector<16x32xbf16>
    %c0_39 = arith.constant 0 : index
    %c0_40 = arith.constant 0 : index
    %132 = vector.load %arg4[%c0_39, %c0_40] : memref<32x32xbf16, #tpu.memory_space<vmem>>, vector<32x32xbf16>
    %cst_41 = arith.constant dense<0.000000e+00> : vector<16x32xf32>
    %133 = tpu.matmul %131, %132, %cst_41 {dimension_numbers = #tpu.dot_dimension_numbers<[1], [0], [0], [1], [0, 0, 1, 1], [], []>} : vector<16x32xbf16>, vector<32x32xbf16>, vector<16x32xf32> -> vector<16x32xf32>
    %c0_42 = arith.constant 0 : index
    %c0_43 = arith.constant 0 : index
    %134 = vector.load %arg5[%c0_42, %c0_43] : memref<1x32xf32, #tpu.memory_space<vmem>>, vector<1x32xf32>
    %135 = vector.broadcast %134 : vector<1x32xf32> to vector<16x32xf32>
    %136 = arith.addf %133, %135 : vector<16x32xf32>
    %137 = arith.addf %1, %136 : vector<16x32xf32>
    %cst_44 = arith.constant dense<0.000000e+00> : vector<16xf32>
    %138 = vector.multi_reduction <add>, %137, %cst_44 [1] : vector<16x32xf32> to vector<16xf32>
    %139 = vector.shape_cast %138 : vector<16xf32> to vector<16x1xf32>
    %cst_45 = arith.constant 3.200000e+01 : f32
    %140 = vector.broadcast %cst_45 : f32 to vector<16x1xf32>
    %141 = arith.divf %139, %140 : vector<16x1xf32>
    %142 = vector.broadcast %141 : vector<16x1xf32> to vector<16x32xf32>
    %143 = arith.subf %137, %142 : vector<16x32xf32>
    %144 = arith.mulf %143, %143 : vector<16x32xf32>
    %cst_46 = arith.constant dense<0.000000e+00> : vector<16xf32>
    %145 = vector.multi_reduction <add>, %144, %cst_46 [1] : vector<16x32xf32> to vector<16xf32>
    %146 = vector.shape_cast %145 : vector<16xf32> to vector<16x1xf32>
    %cst_47 = arith.constant 3.200000e+01 : f32
    %147 = vector.broadcast %cst_47 : f32 to vector<16x1xf32>
    %148 = arith.divf %146, %147 : vector<16x1xf32>
    %cst_48 = arith.constant 9.99999974E-6 : f32
    %149 = vector.broadcast %cst_48 : f32 to vector<16x1xf32>
    %150 = arith.addf %148, %149 : vector<16x1xf32>
    %151 = math.rsqrt %150 : vector<16x1xf32>
    %152 = vector.broadcast %151 : vector<16x1xf32> to vector<16x32xf32>
    %153 = arith.mulf %143, %152 : vector<16x32xf32>
    %c0_49 = arith.constant 0 : index
    %c0_50 = arith.constant 0 : index
    %154 = vector.load %arg6[%c0_49, %c0_50] : memref<1x32xf32, #tpu.memory_space<vmem>>, vector<1x32xf32>
    %155 = vector.broadcast %154 : vector<1x32xf32> to vector<16x32xf32>
    %156 = arith.mulf %153, %155 : vector<16x32xf32>
    %c0_51 = arith.constant 0 : index
    %c0_52 = arith.constant 0 : index
    %157 = vector.load %arg7[%c0_51, %c0_52] : memref<1x32xf32, #tpu.memory_space<vmem>>, vector<1x32xf32>
    %158 = vector.broadcast %157 : vector<1x32xf32> to vector<16x32xf32>
    %159 = arith.addf %156, %158 : vector<16x32xf32>
    %160 = arith.truncf %159 : vector<16x32xf32> to vector<16x32xbf16>
    %c0_53 = arith.constant 0 : index
    %c0_54 = arith.constant 0 : index
    %161 = vector.load %arg8[%c0_53, %c0_54] : memref<32x64xbf16, #tpu.memory_space<vmem>>, vector<32x64xbf16>
    %cst_55 = arith.constant dense<0.000000e+00> : vector<16x64xf32>
    %162 = tpu.matmul %160, %161, %cst_55 {dimension_numbers = #tpu.dot_dimension_numbers<[1], [0], [0], [1], [0, 0, 1, 1], [], []>} : vector<16x32xbf16>, vector<32x64xbf16>, vector<16x64xf32> -> vector<16x64xf32>
    %c0_56 = arith.constant 0 : index
    %c0_57 = arith.constant 0 : index
    %163 = vector.load %arg9[%c0_56, %c0_57] : memref<1x64xf32, #tpu.memory_space<vmem>>, vector<1x64xf32>
    %164 = vector.broadcast %163 : vector<1x64xf32> to vector<16x64xf32>
    %165 = arith.addf %162, %164 : vector<16x64xf32>
    %cst_58 = arith.constant 0.000000e+00 : f32
    %166 = vector.broadcast %cst_58 : f32 to vector<16x64xf32>
    %167 = arith.maximumf %165, %166 : vector<16x64xf32>
    %168 = arith.truncf %167 : vector<16x64xf32> to vector<16x64xbf16>
    %c0_59 = arith.constant 0 : index
    %c0_60 = arith.constant 0 : index
    %169 = vector.load %arg10[%c0_59, %c0_60] : memref<64x32xbf16, #tpu.memory_space<vmem>>, vector<64x32xbf16>
    %cst_61 = arith.constant dense<0.000000e+00> : vector<16x32xf32>
    %170 = tpu.matmul %168, %169, %cst_61 {dimension_numbers = #tpu.dot_dimension_numbers<[1], [0], [0], [1], [0, 0, 1, 1], [], []>} : vector<16x64xbf16>, vector<64x32xbf16>, vector<16x32xf32> -> vector<16x32xf32>
    %c0_62 = arith.constant 0 : index
    %c0_63 = arith.constant 0 : index
    %171 = vector.load %arg11[%c0_62, %c0_63] : memref<1x32xf32, #tpu.memory_space<vmem>>, vector<1x32xf32>
    %172 = vector.broadcast %171 : vector<1x32xf32> to vector<16x32xf32>
    %173 = arith.addf %170, %172 : vector<16x32xf32>
    %174 = arith.addf %159, %173 : vector<16x32xf32>
    %cst_64 = arith.constant dense<0.000000e+00> : vector<16xf32>
    %175 = vector.multi_reduction <add>, %174, %cst_64 [1] : vector<16x32xf32> to vector<16xf32>
    %176 = vector.shape_cast %175 : vector<16xf32> to vector<16x1xf32>
    %cst_65 = arith.constant 3.200000e+01 : f32
    %177 = vector.broadcast %cst_65 : f32 to vector<16x1xf32>
    %178 = arith.divf %176, %177 : vector<16x1xf32>
    %179 = vector.broadcast %178 : vector<16x1xf32> to vector<16x32xf32>
    %180 = arith.subf %174, %179 : vector<16x32xf32>
    %181 = arith.mulf %180, %180 : vector<16x32xf32>
    %cst_66 = arith.constant dense<0.000000e+00> : vector<16xf32>
    %182 = vector.multi_reduction <add>, %181, %cst_66 [1] : vector<16x32xf32> to vector<16xf32>
    %183 = vector.shape_cast %182 : vector<16xf32> to vector<16x1xf32>
    %cst_67 = arith.constant 3.200000e+01 : f32
    %184 = vector.broadcast %cst_67 : f32 to vector<16x1xf32>
    %185 = arith.divf %183, %184 : vector<16x1xf32>
    %cst_68 = arith.constant 9.99999974E-6 : f32
    %186 = vector.broadcast %cst_68 : f32 to vector<16x1xf32>
    %187 = arith.addf %185, %186 : vector<16x1xf32>
    %188 = math.rsqrt %187 : vector<16x1xf32>
    %189 = vector.broadcast %188 : vector<16x1xf32> to vector<16x32xf32>
    %190 = arith.mulf %180, %189 : vector<16x32xf32>
    %c0_69 = arith.constant 0 : index
    %c0_70 = arith.constant 0 : index
    %191 = vector.load %arg12[%c0_69, %c0_70] : memref<1x32xf32, #tpu.memory_space<vmem>>, vector<1x32xf32>
    %192 = vector.broadcast %191 : vector<1x32xf32> to vector<16x32xf32>
    %193 = arith.mulf %190, %192 : vector<16x32xf32>
    %c0_71 = arith.constant 0 : index
    %c0_72 = arith.constant 0 : index
    %194 = vector.load %arg13[%c0_71, %c0_72] : memref<1x32xf32, #tpu.memory_space<vmem>>, vector<1x32xf32>
    %195 = vector.broadcast %194 : vector<1x32xf32> to vector<16x32xf32>
    %196 = arith.addf %193, %195 : vector<16x32xf32>
    %c0_73 = arith.constant 0 : index
    %c0_74 = arith.constant 0 : index
    %c0_75 = arith.constant 0 : index
    %197 = vector.load %arg14[%c0_73, %c0_74, %c0_75] : memref<1x16x32xf32, #tpu.memory_space<vmem>>, vector<1x16x32xf32>
    %198 = vector.shape_cast %197 : vector<1x16x32xf32> to vector<16x32xf32>
    %199 = vector.shape_cast %196 : vector<16x32xf32> to vector<1x16x32xf32>
    tpu.vector_store %arg14[%c0_73, %c0_74, %c0_75], %199 {strides = array<i32>} : memref<1x16x32xf32, #tpu.memory_space<vmem>>, vector<1x16x32xf32>,
    return
  }
  func.func @transform_0(%arg0: i32) -> (i32, i32, i32) {
    %c0_i32 = arith.constant 0 : i32
    %c0_i32_0 = arith.constant 0 : i32
    %c0_i32_1 = arith.constant 0 : i32
    return %arg0, %c0_i32, %c0_i32_0 : i32, i32, i32
  }
  func.func @transform_1(%arg0: i32) -> (i32, i32) {
    %c0_i32 = arith.constant 0 : i32
    %c0_i32_0 = arith.constant 0 : i32
    %c0_i32_1 = arith.constant 0 : i32
    return %c0_i32, %c0_i32_0 : i32, i32
  }
  func.func @transform_2(%arg0: i32) -> (i32, i32) {
    %c0_i32 = arith.constant 0 : i32
    %c0_i32_0 = arith.constant 0 : i32
    %c0_i32_1 = arith.constant 0 : i32
    return %c0_i32, %c0_i32_0 : i32, i32
  }
  func.func @transform_3(%arg0: i32) -> (i32, i32) {
    %c0_i32 = arith.constant 0 : i32
    %c0_i32_0 = arith.constant 0 : i32
    %c0_i32_1 = arith.constant 0 : i32
    return %c0_i32, %c0_i32_0 : i32, i32
  }
  func.func @transform_4(%arg0: i32) -> (i32, i32) {
    %c0_i32 = arith.constant 0 : i32
    %c0_i32_0 = arith.constant 0 : i32
    %c0_i32_1 = arith.constant 0 : i32
    return %c0_i32, %c0_i32_0 : i32, i32
  }
  func.func @transform_5(%arg0: i32) -> (i32, i32) {
    %c0_i32 = arith.constant 0 : i32
    %c0_i32_0 = arith.constant 0 : i32
    %c0_i32_1 = arith.constant 0 : i32
    return %c0_i32, %c0_i32_0 : i32, i32
  }
  func.func @transform_6(%arg0: i32) -> (i32, i32) {
    %c0_i32 = arith.constant 0 : i32
    %c0_i32_0 = arith.constant 0 : i32
    %c0_i32_1 = arith.constant 0 : i32
    return %c0_i32, %c0_i32_0 : i32, i32
  }
  func.func @transform_7(%arg0: i32) -> (i32, i32) {
    %c0_i32 = arith.constant 0 : i32
    %c0_i32_0 = arith.constant 0 : i32
    %c0_i32_1 = arith.constant 0 : i32
    return %c0_i32, %c0_i32_0 : i32, i32
  }
  func.func @transform_8(%arg0: i32) -> (i32, i32) {
    %c0_i32 = arith.constant 0 : i32
    %c0_i32_0 = arith.constant 0 : i32
    %c0_i32_1 = arith.constant 0 : i32
    return %c0_i32, %c0_i32_0 : i32, i32
  }
  func.func @transform_9(%arg0: i32) -> (i32, i32) {
    %c0_i32 = arith.constant 0 : i32
    %c0_i32_0 = arith.constant 0 : i32
    %c0_i32_1 = arith.constant 0 : i32
    return %c0_i32, %c0_i32_0 : i32, i32
  }
  func.func @transform_10(%arg0: i32) -> (i32, i32) {
    %c0_i32 = arith.constant 0 : i32
    %c0_i32_0 = arith.constant 0 : i32
    %c0_i32_1 = arith.constant 0 : i32
    return %c0_i32, %c0_i32_0 : i32, i32
  }
  func.func @transform_11(%arg0: i32) -> (i32, i32) {
    %c0_i32 = arith.constant 0 : i32
    %c0_i32_0 = arith.constant 0 : i32
    %c0_i32_1 = arith.constant 0 : i32
    return %c0_i32, %c0_i32_0 : i32, i32
  }
  func.func @transform_12(%arg0: i32) -> (i32, i32) {
    %c0_i32 = arith.constant 0 : i32
    %c0_i32_0 = arith.constant 0 : i32
    %c0_i32_1 = arith.constant 0 : i32
    return %c0_i32, %c0_i32_0 : i32, i32
  }
  func.func @transform_13(%arg0: i32) -> (i32, i32, i32) {
    %c0_i32 = arith.constant 0 : i32
    %c0_i32_0 = arith.constant 0 : i32
    %c0_i32_1 = arith.constant 0 : i32
    return %arg0, %c0_i32, %c0_i32_0 : i32, i32, i32
  }
}

module attributes {stable_mosaic.version = 11 : i64} {
  func.func @_final_norm_proj_kernel(%arg0: i32, %arg1: memref<1x16x32xf32, #tpu.memory_space<vmem>>, %arg2: memref<1x32xf32, #tpu.memory_space<vmem>>, %arg3: memref<1x32xf32, #tpu.memory_space<vmem>>, %arg4: memref<32x4xbf16, #tpu.memory_space<vmem>>, %arg5: memref<1x4xf32, #tpu.memory_space<vmem>>, %arg6: memref<1x16x4xf32, #tpu.memory_space<vmem>>) attributes {dimension_semantics = [#tpu.dimension_semantics<parallel>], iteration_bounds = array<i64: 2>, scalar_prefetch = 0 : i64, scratch_operands = 0 : i64, tpu.core_type = #tpu.core_type<tc>, window_params = [{transform_indices = @transform_0, window_bounds = array<i64: 1, 16, 32>}, {pipeline_mode = #tpu.pipeline_mode<synchronous>, transform_indices = @transform_1, window_bounds = array<i64: 1, 32>}, {pipeline_mode = #tpu.pipeline_mode<synchronous>, transform_indices = @transform_2, window_bounds = array<i64: 1, 32>}, {pipeline_mode = #tpu.pipeline_mode<synchronous>, transform_indices = @transform_3, window_bounds = array<i64: 32, 4>}, {pipeline_mode = #tpu.pipeline_mode<synchronous>, transform_indices = @transform_4, window_bounds = array<i64: 1, 4>}, {transform_indices = @transform_5, window_bounds = array<i64: 1, 16, 4>}]} {
    %c0 = arith.constant 0 : index
    %c0_0 = arith.constant 0 : index
    %c0_1 = arith.constant 0 : index
    %0 = vector.load %arg1[%c0, %c0_0, %c0_1] : memref<1x16x32xf32, #tpu.memory_space<vmem>>, vector<1x16x32xf32>
    %1 = vector.shape_cast %0 : vector<1x16x32xf32> to vector<16x32xf32>
    %cst = arith.constant dense<0.000000e+00> : vector<16xf32>
    %2 = vector.multi_reduction <add>, %1, %cst [1] : vector<16x32xf32> to vector<16xf32>
    %3 = vector.shape_cast %2 : vector<16xf32> to vector<16x1xf32>
    %cst_2 = arith.constant 3.200000e+01 : f32
    %4 = vector.broadcast %cst_2 : f32 to vector<16x1xf32>
    %5 = arith.divf %3, %4 : vector<16x1xf32>
    %6 = vector.broadcast %5 : vector<16x1xf32> to vector<16x32xf32>
    %7 = arith.subf %1, %6 : vector<16x32xf32>
    %8 = arith.mulf %7, %7 : vector<16x32xf32>
    %cst_3 = arith.constant dense<0.000000e+00> : vector<16xf32>
    %9 = vector.multi_reduction <add>, %8, %cst_3 [1] : vector<16x32xf32> to vector<16xf32>
    %10 = vector.shape_cast %9 : vector<16xf32> to vector<16x1xf32>
    %cst_4 = arith.constant 3.200000e+01 : f32
    %11 = vector.broadcast %cst_4 : f32 to vector<16x1xf32>
    %12 = arith.divf %10, %11 : vector<16x1xf32>
    %cst_5 = arith.constant 9.99999974E-6 : f32
    %13 = vector.broadcast %cst_5 : f32 to vector<16x1xf32>
    %14 = arith.addf %12, %13 : vector<16x1xf32>
    %15 = math.rsqrt %14 : vector<16x1xf32>
    %16 = vector.broadcast %15 : vector<16x1xf32> to vector<16x32xf32>
    %17 = arith.mulf %7, %16 : vector<16x32xf32>
    %c0_6 = arith.constant 0 : index
    %c0_7 = arith.constant 0 : index
    %18 = vector.load %arg2[%c0_6, %c0_7] : memref<1x32xf32, #tpu.memory_space<vmem>>, vector<1x32xf32>
    %19 = vector.broadcast %18 : vector<1x32xf32> to vector<16x32xf32>
    %20 = arith.mulf %17, %19 : vector<16x32xf32>
    %c0_8 = arith.constant 0 : index
    %c0_9 = arith.constant 0 : index
    %21 = vector.load %arg3[%c0_8, %c0_9] : memref<1x32xf32, #tpu.memory_space<vmem>>, vector<1x32xf32>
    %22 = vector.broadcast %21 : vector<1x32xf32> to vector<16x32xf32>
    %23 = arith.addf %20, %22 : vector<16x32xf32>
    %24 = arith.truncf %23 : vector<16x32xf32> to vector<16x32xbf16>
    %c0_10 = arith.constant 0 : index
    %c0_11 = arith.constant 0 : index
    %25 = vector.load %arg4[%c0_10, %c0_11] : memref<32x4xbf16, #tpu.memory_space<vmem>>, vector<32x4xbf16>
    %cst_12 = arith.constant dense<0.000000e+00> : vector<16x4xf32>
    %26 = tpu.matmul %24, %25, %cst_12 {dimension_numbers = #tpu.dot_dimension_numbers<[1], [0], [0], [1], [0, 0, 1, 1], [], []>} : vector<16x32xbf16>, vector<32x4xbf16>, vector<16x4xf32> -> vector<16x4xf32>
    %c0_13 = arith.constant 0 : index
    %c0_14 = arith.constant 0 : index
    %27 = vector.load %arg5[%c0_13, %c0_14] : memref<1x4xf32, #tpu.memory_space<vmem>>, vector<1x4xf32>
    %28 = vector.broadcast %27 : vector<1x4xf32> to vector<16x4xf32>
    %29 = arith.addf %26, %28 : vector<16x4xf32>
    %c0_15 = arith.constant 0 : index
    %c0_16 = arith.constant 0 : index
    %c0_17 = arith.constant 0 : index
    %30 = vector.load %arg6[%c0_15, %c0_16, %c0_17] : memref<1x16x4xf32, #tpu.memory_space<vmem>>, vector<1x16x4xf32>
    %31 = vector.shape_cast %30 : vector<1x16x4xf32> to vector<16x4xf32>
    %32 = vector.shape_cast %29 : vector<16x4xf32> to vector<1x16x4xf32>
    tpu.vector_store %arg6[%c0_15, %c0_16, %c0_17], %32 {strides = array<i32>} : memref<1x16x4xf32, #tpu.memory_space<vmem>>, vector<1x16x4xf32>,
    return
  }
  func.func @transform_0(%arg0: i32) -> (i32, i32, i32) {
    %c0_i32 = arith.constant 0 : i32
    %c0_i32_0 = arith.constant 0 : i32
    %c0_i32_1 = arith.constant 0 : i32
    return %arg0, %c0_i32, %c0_i32_0 : i32, i32, i32
  }
  func.func @transform_1(%arg0: i32) -> (i32, i32) {
    %c0_i32 = arith.constant 0 : i32
    %c0_i32_0 = arith.constant 0 : i32
    %c0_i32_1 = arith.constant 0 : i32
    return %c0_i32, %c0_i32_0 : i32, i32
  }
  func.func @transform_2(%arg0: i32) -> (i32, i32) {
    %c0_i32 = arith.constant 0 : i32
    %c0_i32_0 = arith.constant 0 : i32
    %c0_i32_1 = arith.constant 0 : i32
    return %c0_i32, %c0_i32_0 : i32, i32
  }
  func.func @transform_3(%arg0: i32) -> (i32, i32) {
    %c0_i32 = arith.constant 0 : i32
    %c0_i32_0 = arith.constant 0 : i32
    %c0_i32_1 = arith.constant 0 : i32
    return %c0_i32, %c0_i32_0 : i32, i32
  }
  func.func @transform_4(%arg0: i32) -> (i32, i32) {
    %c0_i32 = arith.constant 0 : i32
    %c0_i32_0 = arith.constant 0 : i32
    %c0_i32_1 = arith.constant 0 : i32
    return %c0_i32, %c0_i32_0 : i32, i32
  }
  func.func @transform_5(%arg0: i32) -> (i32, i32, i32) {
    %c0_i32 = arith.constant 0 : i32
    %c0_i32_0 = arith.constant 0 : i32
    %c0_i32_1 = arith.constant 0 : i32
    return %arg0, %c0_i32, %c0_i32_0 : i32, i32, i32
  }
}

</mosaic_0001>

<bundles_post_ra>
// kernel: _lambda_.4
= control target key start
LH: loop header
LB: loop body
LE: loop exit
PB: predicated region body
PF: predicated region fallthrough
CT: control target
= control target key end

     0   :  { %s530_s18 = smov 0   ;;  %s562_s0 = inlined_call_operand.vmem [shape: bf16[2,16,12], index: 0, kind: input, shape index: {}]   ;;  %s563_s1 = inlined_call_operand.vmem [shape: bf16[12,32], index: 1, kind: input, shape index: {}]   ;;  %s564_s2 = inlined_call_operand.vmem [shape: bf16[2,16,4], index: 2, kind: input, shape index: {}]   ;;  %s565_s3 = inlined_call_operand.vmem [shape: bf16[4,32], index: 3, kind: input, shape index: {}]   ;;  %s566_s4 = inlined_call_operand.vmem [shape: f32[16,32], index: 4, kind: input, shape index: {}]   ;;  %s567_s5 = inlined_call_operand.vmem [shape: f32[2,16,32], index: 5, kind: output, shape index: {}]  }
   0x1 LB: > { %s440_s19 = sadd.s32 4294967295, %s496_s18   ;;  %p444_p0 = scmp.ge.s32.totalorder %s496_s18, 1  ;;  %s496_s18 = sphi %s530_s18, %s15_s18  }
   0x2   : > { %p197_p1 = scmp.lt.s32.totalorder %s496_s18, 3 }
   0x4   : > { %p198_p2 = pnand %p444_p0, %p197_p1 }
   0x5   : > { %p230_p3 = scmp.lt.s32.totalorder (!%p198_p2), %s440_s19, 1 }
   0x6   : > { %201 = sbr.rel (%p198_p2) target bundleno = 219 (0xdb), region = 40 }
   0xb   : > { %v252_v0 = vld [vmem:[%s565_s3] sm:$0x3]  ;;  %vm262_vm0 = vcmask 1041408   ;;  %v498_v1 = vmov 0.0   ;;  %vm321_vm1 = vcmask 1045504   ;;  %vm499_vm2 = vmmov 0  }
   0xc   : > { %465 = vmatprep.subr.bf16.mxu0 %v498_v1  ;;  %471 = vmatprep.subr.bf16.mxu1 %v498_v1  ;;  %v264_v2 = vsel %vm262_vm0, %v252_v0, 0  ;;  %v487_v3 = vld [vmem:[%s563_s1] sm:$0x3f]   ;;  %s569_s19 = smov (!%p230_p3, %s440_s19), 1  ;;  %vm258_vm3 = vcmask 31744   ;;  %vm317_vm4 = vcmask 97280  }
   0xd   : > { %466 = vmatpush3.bf16.msra.mxu0 %v264_v2  ;;  %v323_v4 = vsel %vm321_vm1, %v487_v3, 0  ;;  %467 = vmatprep.mubr.msk.bf16.mxu0 %vm499_vm2, %v498_v1  ;;  %s458_s24 = sshll.u32 %s569_s19, 3  ;;  %s460_s6 = sshll.u32 %s569_s19, 4  ;;  %v366_v9 = vld [vmem:[%s566_s4] sm:$0xff]  ;;  %vm370_vm5 = vcmask 261120   ;;  %v367_v16 = vld [vmem:[%s566_s4 + $0x8] sm:$0xff] }
   0xe   : > { %473 = vmatprep.mubr.msk.bf16.mxu1 %vm499_vm2, %v498_v1  ;;  %472 = vmatpush3.bf16.msra.mxu1 %v323_v4  ;;  %s239_s27 = scalar_lea.vmem %s564_s2, %s458_s24  ;;  %s234_s30 = scalar_lea.vmem %s562_s0, %s458_s24 }
   0xf   : > { %v488_v5 = vld [vmem:[%s239_s27] sm:$0xff]   ;;  %s244_s11 = scalar_lea.vmem %s567_s5, %s460_s6 }
  0x10   : > { %v489_v6 = vld [vmem:[%s234_s30] sm:$0xff]   ;;  %468 = vmatmul.mubr.msk.bf16.vlgmr.msra.gmra.mxu0 %vm258_vm3, %v488_v5 }
  0x11   : > { %474 = vmatmul.mubr.msk.bf16.vlgmr.msra.gmra.mxu1 %vm317_vm4, %v489_v6 }
  0xd0   : > { %v300_v7 = vpop.f32.mrf.mxu0 }
  0xd1   : > { %v359_v8 = vpop.f32.mrf.mxu1 }
  0xd2   : > { %v360_v10 = vadd.f32 %v359_v8, %v300_v7  ;;  %v469_v11 = vpop.f32.mrf.mxu0 }
  0xd3   : > { %v475_v12 = vpop.f32.mrf.mxu1 }
  0xd4   : > { %v368_v13 = vadd.f32 %v366_v9, %v360_v10  ;;  %v303_v14 = vpop.f32.mrf.mxu0 }
  0xd5   : > { %v362_v15 = vpop.f32.mrf.mxu1 }
  0xd6   : > { %371 = vst.msk [vmem:[%s244_s11] sm:$0xff] %vm370_vm5, %v368_v13  ;;  %v363_v17 = vadd.f32 %v362_v15, %v303_v14  ;;  %v470_v18 = vpop.f32.mrf.mxu0 }
  0xd7   : > { %v476_v19 = vpop.f32.mrf.mxu1 }
  0xd8   : > { %v369_v20 = vadd.f32 %v367_v16, %v363_v17 }
  0xda   : > { %372 = vst.msk [vmem:[%s244_s11 + $0x8] sm:$0xff] %vm370_vm5, %v369_v20 }
  0xdb PF: > { %s15_s18 = sadd.s32 1, %s496_s18  }
  0xdc   : > { %p12_p4 = scmp.ge.s32.totalorder %s15_s18, 4  }
  0xde   :  { %14 = sbr.rel (!%p12_p4) target bundleno = 1 (0x1), region = 73 }

// kernel: _lambda_.7
= control target key start
LH: loop header
LB: loop body
LE: loop exit
PB: predicated region body
PF: predicated region fallthrough
CT: control target
= control target key end

     0   :  { %s486_s18 = smov 0   ;;  %s530_s0 = inlined_call_operand.vmem [shape: f32[2,16,32], index: 0, kind: input, shape index: {}]   ;;  %s531_s1 = inlined_call_operand.vmem [shape: f32[1,32], index: 1, kind: input, shape index: {}]   ;;  %s532_s2 = inlined_call_operand.vmem [shape: f32[1,32], index: 2, kind: input, shape index: {}]   ;;  %s533_s3 = inlined_call_operand.vmem [shape: bf16[32,4], index: 3, kind: input, shape index: {}]   ;;  %s534_s4 = inlined_call_operand.vmem [shape: f32[1,4], index: 4, kind: input, shape index: {}]   ;;  %s535_s5 = inlined_call_operand.vmem [shape: f32[2,16,4], index: 5, kind: output, shape index: {}]  }
   0x1 LB: > { %s400_s19 = sadd.s32 4294967295, %s452_s18   ;;  %p404_p0 = scmp.ge.s32.totalorder %s452_s18, 1  ;;  %s452_s18 = sphi %s486_s18, %s15_s18  }
   0x2   : > { %p187_p1 = scmp.lt.s32.totalorder %s452_s18, 3 }
   0x4   : > { %p188_p2 = pnand %p404_p0, %p187_p1 }
   0x5   : > { %p215_p3 = scmp.lt.s32.totalorder (!%p188_p2), %s400_s19, 1 }
   0x6   : > { %191 = sbr.rel (%p188_p2) target bundleno = 529 (0x211), region = 40 }
   0xb   : > { %s537_s19 = smov (!%p215_p3, %s400_s19), 1  ;;  %vm228_vm0 = vcmask 261120   ;;  %v440_v14 = vld [vmem:[%s533_s3 + $0x8] sm:$0xff]   ;;  %v454_v15 = vmov 0.0   ;;  %vm455_vm1 = vmmov 0   ;;  %v441_v16 = vld [vmem:[%s533_s3] sm:$0xff]  }
   0xc   : > { %s417_s20 = sshll.u32 %s537_s19, 4  ;;  %422 = vmatprep.subr.bf16.mxu0 %v454_v15  ;;  %426 = vmatprep.mubr.msk.bf16.mxu0 %vm455_vm1, %v454_v15  ;;  %v409_v25 = vld [vmem:[%s531_s1] ss:$0 sm:$0xff]  ;;  %vm342_vm2 = vcmask 31744  }
   0xd   : > { %s219_s23 = scalar_lea.vmem %s530_s0, %s417_s20  ;;  %423 = vmatpush3.bf16.msra.mxu0 %v440_v14  ;;  %v410_v29 = vld [vmem:[%s532_s2] ss:$0 sm:$0xff]  ;;  %s224_s11 = scalar_lea.vmem %s535_s5, %s417_s20 }
   0xe   : > { %v226_v0 = vld [vmem:[%s219_s23] sm:$0xff]  ;;  %v227_v1 = vld [vmem:[%s219_s23 + $0x8] sm:$0xff]  ;;  %424 = vmatprep.subr.bf16.mxu0 %v454_v15 }
   0xf   : > { %v229_v2 = vsel %vm228_vm0, %v226_v0, 0.0  ;;  %v232_v3 = vsel %vm228_vm0, %v227_v1, 0.0  ;;  %v411_v34 = vld [vmem:[%s534_s4] ss:$0 sm:$0xff] }
  0x10   : > { %230 = vadd.xlane.f32.xlu0 %v229_v2 }
  0x11   : > { %425 = vmatpush3.bf16.msra.mxu0 %v441_v16 }
  0x14   : > { %233 = vadd.xlane.f32.xlu0 %v232_v3 }
  0x99   : > { %v231_v4 = vpop.xlane.xlu0 %230 }
  0x9a   : > { %v236_v5 = vmul.f32 0.03125, %v231_v4 }
  0x9c   : > { %v238_v6 = vsub.f32 %v226_v0, %v236_v5 }
  0x9d   : > { %v234_v7 = vpop.xlane.xlu0 %233 }
  0x9e   : > { %v237_v8 = vmul.f32 0.03125, %v234_v7  ;;  %v240_v9 = vmul.f32 %v238_v6, %v238_v6 }
  0xa0   : > { %v239_v10 = vsub.f32 %v227_v1, %v237_v8  ;;  %v242_v11 = vsel %vm228_vm0, %v240_v9, 0.0 }
  0xa1   : > { %243 = vadd.xlane.f32.xlu1 %v242_v11 }
  0xa2   : > { %v241_v12 = vmul.f32 %v239_v10, %v239_v10 }
  0xa4   : > { %v245_v13 = vsel %vm228_vm0, %v241_v12, 0.0 }
  0xa5   : > { %246 = vadd.xlane.f32.xlu1 %v245_v13 }
 0x12a   : > { %v244_v17 = vpop.xlane.xlu1 %243 }
 0x12b   : > { %v248_v18 = vmul.f32 0.03125, %v244_v17 }
 0x12d   : > { %v250_v19 = vadd.f32 1e-05, %v248_v18 }
 0x12e   : > { %v247_v20 = vpop.xlane.xlu1 %246 }
 0x12f   : > { %442 = vrsqrt.f32 %v250_v19  ;;  %v249_v21 = vmul.f32 0.03125, %v247_v20 }
 0x131   : > { %v251_v22 = vadd.f32 1e-05, %v249_v21 }
 0x133   : > { %444 = vrsqrt.f32 %v251_v22 }
 0x13c   : > { %v443_v23 = vpop.eup %442 }
 0x13d   : > { %v254_v24 = vmul.f32 %v443_v23, %v238_v6 }
 0x13f   : > { %v263_v28 = vmul.f32 %v409_v25, %v254_v24 }
 0x140   : > { %v445_v26 = vpop.eup %444 }
 0x141   : > { %v255_v27 = vmul.f32 %v445_v26, %v239_v10  ;;  %v272_v31 = vadd.f32 %v410_v29, %v263_v28 }
 0x143   : > { %v264_v30 = vmul.f32 %v409_v25, %v255_v27 }
 0x145   : > { %v273_v32 = vadd.f32 %v410_v29, %v264_v30 }
 0x147   : > { %v274_v33 = vpack.c.bf16 %v273_v32, %v272_v31 }
 0x149   : > { %427 = vmatmul.mubr.msk.bf16.vlgmr.msra.gmra.mxu0 %vm228_vm0, %v274_v33 }
 0x209   : > { %v335_v35 = vpop.f32.mrf.mxu0 }
 0x20a   : > { %v336_v36 = vadd.f32 %v411_v34, %v335_v35 }
 0x20b   : > { %v428_v37 = vpop.f32.mrf.mxu0 }
 0x20c   : > { %343 = vst.msk [vmem:[%s224_s11] sm:$0xff] %vm342_vm2, %v336_v36 }
 0x20d   : > { %v338_v38 = vpop.f32.mrf.mxu0 }
 0x20e   : > { %v339_v39 = vadd.f32 %v411_v34, %v338_v38 }
 0x20f   : > { %v429_v40 = vpop.f32.mrf.mxu0 }
 0x210   : > { %344 = vst.msk [vmem:[%s224_s11 + $0x8] sm:$0xff] %vm342_vm2, %v339_v39 }
 0x211 PF: > { %s15_s18 = sadd.s32 1, %s452_s18  }
 0x212   : > { %p12_p4 = scmp.ge.s32.totalorder %s15_s18, 4  }
 0x214   :  { %14 = sbr.rel (!%p12_p4) target bundleno = 1 (0x1), region = 70 }

// kernel: _lambda_.5
= control target key start
LH: loop header
LB: loop body
LE: loop exit
PB: predicated region body
PF: predicated region fallthrough
CT: control target
= control target key end

     0   :  { %s1977_s25 = smov 0   ;;  %s2247_s0 = inlined_call_operand.vmem [shape: f32[2,16,32], index: 0, kind: input, shape index: {}]   ;;  %s2248_s1 = inlined_call_operand.vmem [shape: bf16[32,32], index: 1, kind: input, shape index: {}]   ;;  %s2249_s2 = inlined_call_operand.vmem [shape: bf16[32,32], index: 2, kind: input, shape index: {}]   ;;  %s2250_s3 = inlined_call_operand.vmem [shape: bf16[32,32], index: 3, kind: input, shape index: {}]   ;;  %s2251_s4 = inlined_call_operand.vmem [shape: f32[1,32], index: 4, kind: input, shape index: {}, may-alias: {4,6,10,12}]   ;;  %s2252_s5 = inlined_call_operand.vmem [shape: f32[1,32], index: 5, kind: input, shape index: {}, may-alias: {5,11}]   ;;  %s2253_s6 = inlined_call_operand.vmem [shape: f32[1,32], index: 6, kind: input, shape index: {}, may-alias: {4,6,10,12}]   ;;  %s2254_s7 = inlined_call_operand.vmem [shape: bf16[32,64], index: 7, kind: input, shape index: {}]   ;;  %s2255_s8 = inlined_call_operand.vmem [shape: f32[1,64], index: 8, kind: input, shape index: {}]   ;;  %s2256_s9 = inlined_call_operand.vmem [shape: bf16[64,32], index: 9, kind: input, shape index: {}]   ;;  %s2257_s10 = inlined_call_operand.vmem [shape: f32[1,32], index: 10, kind: input, shape index: {}, may-alias: {4,6,10,12}]   ;;  %s2258_s11 = inlined_call_operand.vmem [shape: f32[1,32], index: 11, kind: input, shape index: {}, may-alias: {5,11}]   ;;  %s2259_s12 = inlined_call_operand.vmem [shape: f32[1,32], index: 12, kind: input, shape index: {}, may-alias: {4,6,10,12}]   ;;  %s2260_s13 = inlined_call_operand.vmem [shape: f32[2,16,32], index: 13, kind: output, shape index: {}]  }
   0x1 LB: > { %s1606_s26 = sadd.s32 4294967295, %s1897_s25   ;;  %p1610_p0 = scmp.ge.s32.totalorder %s1897_s25, 1  ;;  %s1897_s25 = sphi %s1977_s25, %s23_s25  }
   0x2   : > { %p387_p1 = scmp.lt.s32.totalorder %s1897_s25, 3 }
   0x4   : > { %p388_p2 = pnand %p1610_p0, %p387_p1 }
   0x5   : > { %p431_p3 = scmp.lt.s32.totalorder (!%p388_p2), %s1606_s26, 1  ;;  %s1901_s18 = smov (!%p388_p2), 112  }
   0x6   : > { %391 = sbr.rel (%p388_p2) target bundleno = 2707 (0xa93), region = 72  ;;  %s1902_s19 = smov (!%p388_p2), 120  }
   0x7   : > { %s1903_s20 = smov (!%p388_p2), 104   ;;  %s1904_s29 = smov (!%p388_p2), 8  }
   0x8   : > { %s1905_s16 = smov (!%p388_p2), 16  }
   0xb   : > { %v1807_v0 = vld [vmem:[%s2248_s1 + $0x8] sm:$0xff]   ;;  %v1899_v1 = vmov 0.0   ;;  %v1808_v2 = vld [vmem:[%s2248_s1] sm:$0xff]   ;;  %vm1900_vm0 = vmmov 0   ;;  %s2262_s26 = smov (!%p431_p3, %s1606_s26), 1  ;;  %vm461_vm1 = vcmask 261120  }
   0xc   : > { %1684 = vmatprep.subr.bf16.mxu1 %v1899_v1  ;;  %1700 = vmatprep.subr.bf16.mxu0 %v1899_v1  ;;  %s1649_s14 = sshll.u32 %s2262_s26, 4  ;;  %vm572_vm2 = vcmask 64512  }
   0xd   : > { %1685 = vmatpush3.bf16.msra.mxu1 %v1807_v0  ;;  %1688 = vmatprep.mubr.msk.bf16.mxu1 %vm1900_vm0, %v1899_v1  ;;  %s435_s17 = scalar_lea.vmem %s2247_s0, %s1649_s14 }
   0xe   : > { %1686 = vmatprep.subr.bf16.mxu1 %v1899_v1  ;;  %1702 = vmatprep.mubr.msk.bf16.mxu0 %vm1900_vm0, %v1899_v1  ;;  %v2007_v3 = vld [vmem:[%s435_s17] sm:$0xff]  ;;  %v2009_v4 = vld [vmem:[%s435_s17 + $0x8] sm:$0xff]  ;;  %s1906_s17 = smov 24  }
   0xf   : > { %v2013_v5 = vpack.c.bf16 %v2009_v4, %v2007_v3 }
  0x11   : > { %1687 = vmatpush3.bf16.msra.mxu1 %v1808_v2 }
  0x12   : > { %1692 = vmatprep.subr.bf16.mxu1 %v1899_v1 }
  0x14   : > { %1689 = vmatmul.mubr.msk.bf16.vlgmr.msra.gmra.mxu1 %vm461_vm1, %v2013_v5 }
  0x15   : > { %1696 = vmatprep.mubr.msk.bf16.mxu1 %vm1900_vm0, %v1899_v1 }
  0xd4   : > { %v2019_v6 = vpop.f32.mrf.mxu1 }
  0xd5   : > { %v570_v7 = vmul.f32 %v2019_v6, %v2019_v6 }
  0xd6   : > { %v1690_v8 = vpop.f32.mrf.mxu1 }
  0xd7   : > { %884 = vrot.lane.b32.xlu1 %v570_v7, %s1901_s18  ;;  %723 = vrot.lane.b32.xlu0 %v570_v7, %s1902_s19  ;;  %v573_v24 = vsel %vm572_vm2, %v570_v7, 0.0 }
  0xd8   : > { %v2025_v9 = vpop.f32.mrf.mxu1 }
  0xd9   : > { %v571_v10 = vmul.f32 %v2025_v9, %v2025_v9  ;;  %v2043_v26 = vpack.c.bf16 %v2025_v9, %v2019_v6 }
  0xda   : > { %v1691_v11 = vpop.f32.mrf.mxu1 }
  0xdb   : > { %886 = vrot.lane.b32.xlu1 %v571_v10, %s1901_s18  ;;  %725 = vrot.lane.b32.xlu0 %v571_v10, %s1902_s19  ;;  %v576_v25 = vsel %vm572_vm2, %v571_v10, 0.0 }
  0xdf   : > { %1045 = vrot.lane.b32.xlu1 %v571_v10, %s1903_s20  ;;  %1043 = vrot.lane.b32.xlu0 %v570_v7, %s1903_s20 }
 0x149   : > { %v885_v12 = vpop.permute.xlu1 %884  ;;  %v724_v13 = vpop.permute.xlu0 %723 }
 0x14a   : > { %v729_v14 = vsel %vm572_vm2, %v724_v13, 0.0  ;;  %v890_v17 = vsel %vm572_vm2, %v885_v12, 0.0 }
 0x14b   : > { %730 = vadd.xlane.f32.xlu0 %v729_v14 }
 0x14d   : > { %v887_v15 = vpop.permute.xlu1 %886  ;;  %v726_v16 = vpop.permute.xlu0 %725 }
 0x14e   : > { %v732_v18 = vsel %vm572_vm2, %v726_v16, 0.0  ;;  %v893_v20 = vsel %vm572_vm2, %v887_v15, 0.0 }
 0x14f   : > { %891 = vadd.xlane.f32.xlu0 %v890_v17  ;;  %733 = vadd.xlane.f32.xlu1 %v732_v18 }
 0x151   : > { %v1044_v19 = vpop.permute.xlu0 %1043  ;;  %v1046_v22 = vpop.permute.xlu1 %1045 }
 0x152   : > { %v1049_v21 = vsel %vm572_vm2, %v1044_v19, 0.0  ;;  %v1052_v23 = vsel %vm572_vm2, %v1046_v22, 0.0 }
 0x153   : > { %894 = vadd.xlane.f32.xlu0 %v893_v20  ;;  %1050 = vadd.xlane.f32.xlu1 %v1049_v21 }
 0x157   : > { %1053 = vadd.xlane.f32.xlu0 %v1052_v23  ;;  %574 = vadd.xlane.f32.xlu1 %v573_v24 }
 0x15b   : > { %577 = vadd.xlane.f32.xlu0 %v576_v25 }
 0x171   : > { %757 = vrot.lane.b32.xlu0 %v2043_v26, %s1902_s19 }
 0x1d4   : > { %v731_v27 = vpop.xlane.xlu0 %730 }
 0x1d5   : > { %1819 = vrsqrt.f32 %v731_v27  ;;  %vm737_vm3 = vcmp.eq.f32.partialorder %v731_v27, inf  ;;  %v740_v36 = vand.u32 2147483648, %v731_v27  ;;  %vm739_vm4 = vcmp.eq.f32.partialorder %v731_v27, 0.0 }
 0x1d8   : > { %v734_v28 = vpop.xlane.xlu1 %733  ;;  %v892_v29 = vpop.xlane.xlu0 %891 }
 0x1d9   : > { %1821 = vrsqrt.f32 %v734_v28  ;;  %vm744_vm5 = vcmp.eq.f32.partialorder %v734_v28, inf  ;;  %v747_v44 = vand.u32 2147483648, %v734_v28  ;;  %vm746_vm6 = vcmp.eq.f32.partialorder %v734_v28, 0.0 }
 0x1da   : > { %1823 = vrsqrt.f32 %v892_v29  ;;  %vm898_vm7 = vcmp.eq.f32.partialorder %v892_v29, inf  ;;  %v901_v47 = vand.u32 2147483648, %v892_v29  ;;  %vm900_vm8 = vcmp.eq.f32.partialorder %v892_v29, 0.0 }
 0x1dc   : > { %v1051_v30 = vpop.xlane.xlu1 %1050  ;;  %v895_v31 = vpop.xlane.xlu0 %894 }
 0x1dd   : > { %1825 = vrsqrt.f32 %v1051_v30  ;;  %vm1057_vm9 = vcmp.eq.f32.partialorder %v1051_v30, inf  ;;  %vm1059_vm10 = vcmp.eq.f32.partialorder %v1051_v30, 0.0  ;;  %v1060_v56 = vand.u32 2147483648, %v1051_v30 }
 0x1de   : > { %1827 = vrsqrt.f32 %v895_v31  ;;  %vm905_vm11 = vcmp.eq.f32.partialorder %v895_v31, inf  ;;  %v908_v59 = vand.u32 2147483648, %v895_v31  ;;  %vm907_vm12 = vcmp.eq.f32.partialorder %v895_v31, 0.0 }
 0x1e0   : > { %v2047_v32 = vpop.xlane.xlu1 %574  ;;  %v2049_v33 = vpop.xlane.xlu0 %1053 }
 0x1e1   : > { %1829 = vrsqrt.f32 %v2047_v32  ;;  %vm581_vm13 = vcmp.eq.f32.partialorder %v2047_v32, inf  ;;  %v584_v7 = vand.u32 2147483648, %v2047_v32  ;;  %vm583_vm14 = vcmp.eq.f32.partialorder %v2047_v32, 0.0 }
 0x1e2   : > { %v1820_v34 = vpop.eup %1819  ;;  %1831 = vrsqrt.f32 %v2049_v33  ;;  %vm1064_vm15 = vcmp.eq.f32.partialorder %v2049_v33, inf  ;;  %v1067_v13 = vand.u32 2147483648, %v2049_v33 }
 0x1e3   : > { %v736_v35 = vmul.f32 %v1820_v34, %v731_v27 }
 0x1e4   : > { %v2053_v37 = vpop.xlane.xlu0 %577 }
 0x1e5   : > { %v738_v38 = vsel %vm737_vm3, %v731_v27, %v736_v35  ;;  %1833 = vrsqrt.f32 %v2053_v37  ;;  %vm1066_vm3 = vcmp.eq.f32.partialorder %v2049_v33, 0.0  ;;  %v591_v21 = vand.u32 2147483648, %v2053_v37 }
 0x1e6   : > { %v1822_v39 = vpop.eup %1821  ;;  %v741_v40 = vsel %vm739_vm4, %v740_v36, %v738_v38  ;;  %vm588_vm4 = vcmp.eq.f32.partialorder %v2053_v37, inf }
 0x1e7   : > { %v1824_v41 = vpop.eup %1823  ;;  %v749_v42 = vmax.f32 %v741_v40, 1e-12  ;;  %v743_v43 = vmul.f32 %v1822_v39, %v734_v28 }
 0x1e8   : > { %v897_v45 = vmul.f32 %v1824_v41, %v892_v29 }
 0x1e9   : > { %v745_v46 = vsel %vm744_vm5, %v734_v28, %v743_v43  ;;  %1835 = vrcp.f32 %v749_v42  ;;  %vm590_vm5 = vcmp.eq.f32.partialorder %v2053_v37, 0.0 }
 0x1ea   : > { %v1826_v48 = vpop.eup %1825  ;;  %v748_v49 = vsel %vm746_vm6, %v747_v44, %v745_v46  ;;  %v899_v50 = vsel %vm898_vm7, %v892_v29, %v897_v45  ;;  %vm652_vm7 = vcmask 130048  }
 0x1eb   : > { %v1828_v51 = vpop.eup %1827  ;;  %v750_v52 = vmax.f32 %v748_v49, 1e-12  ;;  %v902_v53 = vsel %vm900_vm8, %v901_v47, %v899_v50  ;;  %v1056_v54 = vmul.f32 %v1826_v48, %v1051_v30  ;;  %v758_v49 = vpop.permute.xlu0 %757 }
 0x1ec   : > { %v910_v55 = vmax.f32 %v902_v53, 1e-12  ;;  %v904_v57 = vmul.f32 %v1828_v51, %v895_v31 }
 0x1ed   : > { %1837 = vrcp.f32 %v750_v52  ;;  %v1058_v58 = vsel %vm1057_vm9, %v1051_v30, %v1056_v54  ;;  %v563_v54 = vlaneseq  ;;  %vm1230_vm9 = vcmask 195584  }
 0x1ee   : > { %v1830_v60 = vpop.eup %1829  ;;  %v1061_v61 = vsel %vm1059_vm10, %v1060_v56, %v1058_v58  ;;  %v906_v62 = vsel %vm905_vm11, %v895_v31, %v904_v57  ;;  %1839 = vrcp.f32 %v910_v55 }
 0x1ef   : > { %v1832_v63 = vpop.eup %1831  ;;  %v909_v0 = vsel %vm907_vm12, %v908_v59, %v906_v62  ;;  %v580_v2 = vmul.f32 %v1830_v60, %v2047_v32  ;;  %v1069_v8 = vmax.f32 %v1061_v61, 1e-12  ;;  %v564_v55 = vshrl.u32 %v563_v54, 7 }
 0x1f0   : > { %v911_v10 = vmax.f32 %v909_v0, 1e-12  ;;  %v1063_v11 = vmul.f32 %v1832_v63, %v2049_v33  ;;  %v567_v56 = vand.u32 127, %v563_v54 }
 0x1f1   : > { %v582_v12 = vsel %vm581_vm13, %v2047_v32, %v580_v2  ;;  %v565_v58 = vadd.s32 8, %v564_v55 }
 0x1f2   : > { %v1834_v14 = vpop.eup %1833  ;;  %1841 = vrcp.f32 %v911_v10  ;;  %v585_v15 = vsel %vm583_vm14, %v584_v7, %v582_v12  ;;  %v1065_v16 = vsel %vm1064_vm15, %v2049_v33, %v1063_v11  ;;  %vm568_vm6 = vcmp.eq.s32.totalorder %v564_v55, %v567_v56 }
 0x1f3   : > { %v593_v17 = vmax.f32 %v585_v15, 1e-12  ;;  %v1068_v18 = vsel %vm1066_vm3, %v1067_v13, %v1065_v16  ;;  %v587_v19 = vmul.f32 %v1834_v14, %v2053_v37  ;;  %1843 = vrcp.f32 %v1069_v8 }
 0x1f4   : > { %v1070_v20 = vmax.f32 %v1068_v18, 1e-12  ;;  %vm569_vm8 = vcmp.eq.s32.totalorder %v565_v58, %v567_v56 }
 0x1f5   : > { %v589_v22 = vsel %vm588_vm4, %v2053_v37, %v587_v19 }
 0x1f6   : > { %1845 = vrcp.f32 %v1070_v20  ;;  %v592_v23 = vsel %vm590_vm5, %v591_v21, %v589_v22  ;;  %v1836_v25 = vpop.eup %1835 }
 0x1f7   : > { %1847 = vrcp.f32 %v593_v17  ;;  %v594_v24 = vmax.f32 %v592_v23, 1e-12  ;;  %v752_v28 = vmul.f32 %v1836_v25, %v2019_v6 }
 0x1f9   : > { %1849 = vrcp.f32 %v594_v24 }
 0x1fa   : > { %v1838_v27 = vpop.eup %1837 }
 0x1fb   : > { %v754_v29 = vmul.f32 %v1838_v27, %v2025_v9  ;;  %v1840_v30 = vpop.eup %1839 }
 0x1fc   : > { %v913_v33 = vmul.f32 %v1840_v30, %v2019_v6 }
 0x1fd   : > { %v755_v31 = vpack.c.bf16 %v754_v29, %v752_v28 }
 0x1ff   : > { %v1842_v32 = vpop.eup %1841  ;;  %760 = vrot.lane.b32.xlu1 %v755_v31, %s1902_s19 }
 0x200   : > { %v915_v34 = vmul.f32 %v1842_v32, %v2025_v9  ;;  %v1844_v35 = vpop.eup %1843 }
 0x201   : > { %v1072_v39 = vmul.f32 %v1844_v35, %v2019_v6 }
 0x202   : > { %v916_v36 = vpack.c.bf16 %v915_v34, %v913_v33 }
 0x203   : > { %v1846_v37 = vpop.eup %1845 }
 0x204   : > { %v1848_v38 = vpop.eup %1847  ;;  %920 = vrot.lane.b32.xlu1 %v916_v36, %s1901_s18  ;;  %v1074_v40 = vmul.f32 %v1846_v37, %v2025_v9 }
 0x205   : > { %v596_v43 = vmul.f32 %v1848_v38, %v2019_v6  ;;  %v1809_v6 = vld [vmem:[%s2249_s2 + $0x8] sm:$0xff]  }
 0x206   : > { %v1850_v41 = vpop.eup %1849  ;;  %v1075_v42 = vpack.c.bf16 %v1074_v40, %v1072_v39  ;;  %1693 = vmatpush3.bf16.msra.mxu1 %v1809_v6 }
 0x207   : > { %v598_v44 = vmul.f32 %v1850_v41, %v2025_v9  ;;  %v1810_v9 = vld [vmem:[%s2249_s2] sm:$0xff]   ;;  %1694 = vmatprep.subr.bf16.mxu1 %v1899_v1 }
 0x208   : > { %917 = vrot.lane.b32.xlu1 %v2043_v26, %s1901_s18  ;;  %1079 = vrot.lane.b32.xlu0 %v1075_v42, %s1903_s20 }
 0x209   : > { %v600_v45 = vpack.c.bf16 %v598_v44, %v596_v43 }
 0x20a   : > { %1695 = vmatpush3.bf16.msra.mxu1 %v1810_v9 }
 0x20b   : > { %v605_v46 = vsel %vm572_vm2, %v600_v45, 0  ;;  %1706 = vmatprep.subr.bf16.mxu1 %v1899_v1 }
 0x20c   : > { %1076 = vrot.lane.b32.xlu1 %v2043_v26, %s1903_s20  ;;  %1701 = vmatpush3.bf16.xpose.msra.mxu0 %v605_v46 }
 0x20d   : > { %1712 = vmatprep.subr.bf16.mxu0 %v1899_v1  ;;  %1697 = vmatmul.mubr.msk.bf16.vlgmr.msra.gmra.mxu1 %vm461_vm1, %v2013_v5 }
 0x20e   : > { %1708 = vmatprep.mubr.msk.bf16.mxu1 %vm1900_vm0, %v1899_v1 }
 0x213   : > { %1703 = vmatmul.mubr.msk.bf16.vlgmr.msra.gmra.mxu0 %vm572_vm2, %v2043_v26 }
 0x214   : > { %1714 = vmatprep.mubr.msk.bf16.mxu0 %vm1900_vm0, %v1899_v1 }
 0x271   : > { %v761_v26 = vpop.permute.xlu1 %760 }
 0x272   : > { %v766_v47 = vsel %vm572_vm2, %v761_v26, 0 }
 0x273   : > { %1713 = vmatpush3.bf16.xpose.msra.mxu0 %v766_v47 }
 0x274   : > { %1724 = vmatprep.subr.bf16.mxu0 %v1899_v1 }
 0x276   : > { %v921_v48 = vpop.permute.xlu1 %920 }
 0x277   : > { %v926_v50 = vsel %vm572_vm2, %v921_v48, 0 }
 0x27a   : > { %1715 = vmatmul.mubr.msk.bf16.vlgmr.msra.gmra.mxu0 %vm572_vm2, %v758_v49  ;;  %v1080_v5 = vpop.permute.xlu0 %1079  ;;  %v918_v51 = vpop.permute.xlu1 %917 }
 0x27b   : > { %1725 = vmatpush3.bf16.xpose.msra.mxu0 %v926_v50  ;;  %1726 = vmatprep.mubr.msk.bf16.mxu0 %vm1900_vm0, %v1899_v1  ;;  %v1085_v52 = vsel %vm572_vm2, %v1080_v5, 0 }
 0x27c   : > { %1736 = vmatprep.subr.bf16.mxu0 %v1899_v1 }
 0x27e   : > { %v1077_v53 = vpop.permute.xlu1 %1076 }
 0x282   : > { %1727 = vmatmul.mubr.msk.bf16.vlgmr.msra.gmra.mxu0 %vm572_vm2, %v918_v51 }
 0x283   : > { %1737 = vmatpush3.bf16.xpose.msra.mxu0 %v1085_v52  ;;  %1738 = vmatprep.mubr.msk.bf16.mxu0 %vm1900_vm0, %v1899_v1 }
 0x284   : > { %1748 = vmatprep.subr.bf16.mxu0 %v1899_v1 }
 0x28a   : > { %1739 = vmatmul.mubr.msk.bf16.vlgmr.msra.gmra.mxu0 %vm572_vm2, %v1077_v53 }
 0x28b   : > { %1752 = vmatprep.mubr.msk.bf16.mxu0 %vm1900_vm0, %v1899_v1 }
 0x2cd   : > { %v556_v10 = vpop.f32.mrf.mxu1 }
 0x2cf   : > { %v1698_v11 = vpop.f32.mrf.mxu1 }
 0x2d1   : > { %v559_v12 = vpop.f32.mrf.mxu1 }
 0x2d2   : > { %v2123_v13 = vpack.c.bf16 %v559_v12, %v556_v10 }
 0x2d3   : > { %v641_v57 = vpop.f32.mrf.mxu0  ;;  %v1699_v14 = vpop.f32.mrf.mxu1 }
 0x2d4   : > { %v648_v59 = vmul.f32 0.35355338, %v641_v57  ;;  %1707 = vmatpush3.bf16.msra.mxu1 %v2123_v13 }
 0x2d5   : > { %v1704_v60 = vpop.f32.mrf.mxu0  ;;  %1718 = vmatprep.subr.bf16.mxu1 %v1899_v1 }
 0x2d6   : > { %v650_v61 = vsel %vm568_vm6, -50000.0, %v648_v59 }
 0x2d7   : > { %v644_v62 = vpop.f32.mrf.mxu0  ;;  %v653_v63 = vsel %vm652_vm7, %v650_v61, -inf }
 0x2d8   : > { %v649_v0 = vmul.f32 0.35355338, %v644_v62  ;;  %654 = vmax.xlane.f32.xlu0 %v653_v63 }
 0x2d9   : > { %v1705_v2 = vpop.f32.mrf.mxu0 }
 0x2da   : > { %v651_v7 = vsel %vm569_vm8, -50000.0, %v649_v0 }
 0x2db   : > { %v656_v8 = vsel %vm652_vm7, %v651_v7, -inf }
 0x2dc   : > { %657 = vmax.xlane.f32.xlu1 %v656_v8 }
 0x33a   : > { %v802_v15 = vpop.f32.mrf.mxu0 }
 0x33b   : > { %v809_v16 = vmul.f32 0.35355338, %v802_v15 }
 0x33c   : > { %v1716_v17 = vpop.f32.mrf.mxu0 }
 0x33d   : > { %v811_v18 = vsel %vm568_vm6, -50000.0, %v809_v16 }
 0x33e   : > { %v805_v19 = vpop.f32.mrf.mxu0  ;;  %v813_v20 = vsel %vm652_vm7, %v811_v18, -inf }
 0x33f   : > { %v810_v21 = vmul.f32 0.35355338, %v805_v19  ;;  %814 = vmax.xlane.f32.xlu0 %v813_v20 }
 0x340   : > { %v1717_v22 = vpop.f32.mrf.mxu0 }
 0x341   : > { %v812_v23 = vsel %vm569_vm8, -50000.0, %v810_v21 }
 0x342   : > { %v962_v24 = vpop.f32.mrf.mxu0  ;;  %v816_v25 = vsel %vm652_vm7, %v812_v23, -inf }
 0x343   : > { %v969_v27 = vmul.f32 0.35355338, %v962_v24  ;;  %817 = vmax.xlane.f32.xlu0 %v816_v25 }
 0x344   : > { %v1728_v28 = vpop.f32.mrf.mxu0 }
 0x345   : > { %v971_v29 = vsel %vm568_vm6, -50000.0, %v969_v27 }
 0x346   : > { %v965_v30 = vpop.f32.mrf.mxu0  ;;  %v973_v31 = vsel %vm652_vm7, %v971_v29, -inf }
 0x347   : > { %v970_v32 = vmul.f32 0.35355338, %v965_v30  ;;  %974 = vmax.xlane.f32.xlu1 %v973_v31 }
 0x348   : > { %v1729_v33 = vpop.f32.mrf.mxu0 }
 0x349   : > { %v972_v34 = vsel %vm569_vm8, -50000.0, %v970_v32 }
 0x34a   : > { %v1121_v35 = vpop.f32.mrf.mxu0  ;;  %v976_v36 = vsel %vm652_vm7, %v972_v34, -inf }
 0x34b   : > { %v1128_v37 = vmul.f32 0.35355338, %v1121_v35  ;;  %977 = vmax.xlane.f32.xlu0 %v976_v36 }
 0x34c   : > { %v1740_v38 = vpop.f32.mrf.mxu0 }
 0x34d   : > { %v1130_v39 = vsel %vm568_vm6, -50000.0, %v1128_v37 }
 0x34e   : > { %v1124_v40 = vpop.f32.mrf.mxu0  ;;  %v1132_v41 = vsel %vm652_vm7, %v1130_v39, -inf }
 0x34f   : > { %v1129_v42 = vmul.f32 0.35355338, %v1124_v40  ;;  %1133 = vmax.xlane.f32.xlu1 %v1132_v41 }
 0x350   : > { %v1741_v43 = vpop.f32.mrf.mxu0 }
 0x351   : > { %v1131_v44 = vsel %vm569_vm8, -50000.0, %v1129_v42 }
 0x352   : > { %v1135_v45 = vsel %vm652_vm7, %v1131_v44, -inf }
 0x353   : > { %1136 = vmax.xlane.f32.xlu0 %v1135_v45 }
 0x361   : > { %v655_v46 = vpop.xlane.xlu0 %654 }
 0x362   : > { %v659_v6 = vsub.f32 %v650_v61, %v655_v46 }
 0x364   : > { %v661_v9 = vmul.f32 1.442695, %v659_v6 }
 0x365   : > { %v658_v26 = vpop.xlane.xlu1 %657 }
 0x366   : > { %1851 = vpow2.f32 %v661_v9  ;;  %v660_v47 = vsub.f32 %v651_v7, %v658_v26 }
 0x368   : > { %v663_v48 = vmul.f32 1.442695, %v660_v47 }
 0x36a   : > { %1853 = vpow2.f32 %v663_v48 }
 0x373   : > { %v1852_v49 = vpop.eup %1851 }
 0x374   : > { %v665_v50 = vsel %vm652_vm7, %v1852_v49, 0.0 }
 0x375   : > { %666 = vadd.xlane.f32.xlu1 %v665_v50 }
 0x377   : > { %v1854_v5 = vpop.eup %1853 }
 0x378   : > { %v668_v51 = vsel %vm652_vm7, %v1854_v5, 0.0 }
 0x379   : > { %669 = vadd.xlane.f32.xlu0 %v668_v51 }
 0x386   : > { %837 = vrot.lane.b32.xlu1 %v2123_v13, %s1902_s19 }
 0x3c8   : > { %v815_v52 = vpop.xlane.xlu0 %814 }
 0x3c9   : > { %v819_v53 = vsub.f32 %v811_v18, %v815_v52 }
 0x3cb   : > { %v821_v54 = vmul.f32 1.442695, %v819_v53 }
 0x3cc   : > { %v818_v55 = vpop.xlane.xlu0 %817 }
 0x3cd   : > { %1855 = vpow2.f32 %v821_v54  ;;  %v820_v56 = vsub.f32 %v812_v23, %v818_v55 }
 0x3cf   : > { %v823_v57 = vmul.f32 1.442695, %v820_v56 }
 0x3d0   : > { %v975_v58 = vpop.xlane.xlu1 %974 }
 0x3d1   : > { %1857 = vpow2.f32 %v823_v57  ;;  %v979_v59 = vsub.f32 %v971_v29, %v975_v58 }
 0x3d3   : > { %v981_v60 = vmul.f32 1.442695, %v979_v59  ;;  %v1811_v59 = vld [vmem:[%s2250_s3 + $0x8] sm:$0xff]  }
 0x3d4   : > { %v978_v61 = vpop.xlane.xlu0 %977  ;;  %1749 = vmatpush3.bf16.msra.mxu0 %v1811_v59 }
 0x3d5   : > { %1859 = vpow2.f32 %v981_v60  ;;  %v980_v62 = vsub.f32 %v972_v34, %v978_v61  ;;  %1750 = vmatprep.subr.bf16.mxu0 %v1899_v1 }
 0x3d7   : > { %v983_v63 = vmul.f32 1.442695, %v980_v62 }
 0x3d8   : > { %v1134_v0 = vpop.xlane.xlu1 %1133 }
 0x3d9   : > { %1861 = vpow2.f32 %v983_v63  ;;  %v1138_v2 = vsub.f32 %v1130_v39, %v1134_v0  ;;  %v1812_v0 = vld [vmem:[%s2250_s3] sm:$0xff]  }
 0x3da   : > { %v1856_v7 = vpop.eup %1855  ;;  %1751 = vmatpush3.bf16.msra.mxu0 %v1812_v0 }
 0x3db   : > { %v1140_v8 = vmul.f32 1.442695, %v1138_v2  ;;  %v825_v10 = vsel %vm652_vm7, %v1856_v7, 0.0  ;;  %1764 = vmatprep.subr.bf16.mxu0 %v1899_v1 }
 0x3dc   : > { %v1137_v11 = vpop.xlane.xlu0 %1136  ;;  %826 = vadd.xlane.f32.xlu1 %v825_v10 }
 0x3dd   : > { %1863 = vpow2.f32 %v1140_v8  ;;  %v1139_v12 = vsub.f32 %v1131_v44, %v1137_v11 }
 0x3de   : > { %v1858_v14 = vpop.eup %1857 }
 0x3df   : > { %v1142_v15 = vmul.f32 1.442695, %v1139_v12  ;;  %v828_v16 = vsel %vm652_vm7, %v1858_v14, 0.0 }
 0x3e0   : > { %829 = vadd.xlane.f32.xlu0 %v828_v16 }
 0x3e1   : > { %1865 = vpow2.f32 %v1142_v15 }
 0x3e2   : > { %v1860_v17 = vpop.eup %1859 }
 0x3e3   : > { %v985_v18 = vsel %vm652_vm7, %v1860_v17, 0.0 }
 0x3e4   : > { %986 = vadd.xlane.f32.xlu1 %v985_v18 }
 0x3e6   : > { %v1862_v19 = vpop.eup %1861 }
 0x3e7   : > { %v988_v20 = vsel %vm652_vm7, %v1862_v19, 0.0 }
 0x3e8   : > { %989 = vadd.xlane.f32.xlu0 %v988_v20 }
 0x3ea   : > { %v1864_v21 = vpop.eup %1863 }
 0x3eb   : > { %v1144_v22 = vsel %vm652_vm7, %v1864_v21, 0.0 }
 0x3ec   : > { %1145 = vadd.xlane.f32.xlu1 %v1144_v22 }
 0x3ee   : > { %v1866_v23 = vpop.eup %1865 }
 0x3ef   : > { %v1147_v24 = vsel %vm652_vm7, %v1866_v23, 0.0 }
 0x3f0   : > { %1148 = vadd.xlane.f32.xlu0 %v1147_v24 }
 0x3fd   : > { %1155 = vrot.lane.b32.xlu1 %v2123_v13, %s1903_s20 }
 0x3fe   : > { %v667_v25 = vpop.xlane.xlu1 %666 }
 0x3ff   : > { %1867 = vrcp.f32 %v667_v25 }
 0x402   : > { %v670_v27 = vpop.xlane.xlu0 %669  ;;  %v838_v33 = vpop.permute.xlu1 %837 }
 0x403   : > { %1869 = vrcp.f32 %v670_v27 }
 0x406   : > { %996 = vrot.lane.b32.xlu0 %v2123_v13, %s1901_s18  ;;  %s440_s18 = scalar_lea.vmem %s2260_s13, %s1649_s14 }
 0x40c   : > { %v1868_v28 = vpop.eup %1867 }
 0x40d   : > { %v673_v30 = vmul.f32 %v1868_v28, %v1852_v49 }
 0x410   : > { %v1870_v29 = vpop.eup %1869 }
 0x411   : > { %v674_v31 = vmul.f32 %v1870_v29, %v1854_v5 }
 0x413   : > { %v675_v32 = vpack.c.bf16 %v674_v31, %v673_v30 }
 0x415   : > { %1709 = vmatmul.mubr.msk.bf16.vlgmr.msra.gmra.mxu1 %vm652_vm7, %v675_v32 }
 0x416   : > { %1719 = vmatpush3.bf16.msra.mxu1 %v838_v33  ;;  %1720 = vmatprep.mubr.msk.bf16.mxu1 %vm1900_vm0, %v1899_v1  ;;  %v1629_v33 = vld [vmem:[%s2251_s4] ss:$0 sm:$0xff] }
 0x417   : > { %1730 = vmatprep.subr.bf16.mxu1 %v1899_v1 }
 0x465   : > { %v827_v34 = vpop.xlane.xlu1 %826 }
 0x466   : > { %1871 = vrcp.f32 %v827_v34 }
 0x469   : > { %v830_v35 = vpop.xlane.xlu0 %829 }
 0x46a   : > { %1873 = vrcp.f32 %v830_v35 }
 0x46d   : > { %v987_v36 = vpop.xlane.xlu1 %986 }
 0x46e   : > { %1875 = vrcp.f32 %v987_v36 }
 0x471   : > { %v990_v13 = vpop.xlane.xlu0 %989 }
 0x472   : > { %1877 = vrcp.f32 %v990_v13 }
 0x473   : > { %v1872_v37 = vpop.eup %1871 }
 0x474   : > { %v833_v40 = vmul.f32 %v1872_v37, %v1856_v7 }
 0x475   : > { %v1146_v38 = vpop.xlane.xlu1 %1145 }
 0x476   : > { %1879 = vrcp.f32 %v1146_v38 }
 0x477   : > { %v1874_v39 = vpop.eup %1873 }
 0x478   : > { %v834_v41 = vmul.f32 %v1874_v39, %v1858_v14 }
 0x479   : > { %v1149_v42 = vpop.xlane.xlu0 %1148  ;;  %v1156_v47 = vpop.permute.xlu1 %1155 }
 0x47a   : > { %1881 = vrcp.f32 %v1149_v42  ;;  %v835_v43 = vpack.c.bf16 %v834_v41, %v833_v40 }
 0x47b   : > { %v1876_v44 = vpop.eup %1875 }
 0x47c   : > { %1721 = vmatmul.mubr.msk.bf16.vlgmr.msra.gmra.mxu1 %vm652_vm7, %v835_v43  ;;  %v993_v6 = vmul.f32 %v1876_v44, %v1860_v17 }
 0x47d   : > { %v997_v45 = vpop.permute.xlu0 %996  ;;  %1732 = vmatprep.mubr.msk.bf16.mxu1 %vm1900_vm0, %v1899_v1 }
 0x47e   : > { %1731 = vmatpush3.bf16.msra.mxu1 %v997_v45 }
 0x47f   : > { %v1878_v46 = vpop.eup %1877  ;;  %1742 = vmatprep.subr.bf16.mxu1 %v1899_v1 }
 0x480   : > { %v994_v9 = vmul.f32 %v1878_v46, %v1862_v19 }
 0x482   : > { %v995_v26 = vpack.c.bf16 %v994_v9, %v993_v6 }
 0x483   : > { %v1880_v48 = vpop.eup %1879 }
 0x484   : > { %1733 = vmatmul.mubr.msk.bf16.vlgmr.msra.gmra.mxu1 %vm652_vm7, %v995_v26  ;;  %v1152_v50 = vmul.f32 %v1880_v48, %v1864_v21 }
 0x485   : > { %1743 = vmatpush3.bf16.msra.mxu1 %v1156_v47  ;;  %1744 = vmatprep.mubr.msk.bf16.mxu1 %vm1900_vm0, %v1899_v1 }
 0x486   : > { %1756 = vmatprep.subr.bf16.mxu1 %v1899_v1 }
 0x487   : > { %v1882_v49 = vpop.eup %1881 }
 0x488   : > { %v1153_v5 = vmul.f32 %v1882_v49, %v1866_v23  ;;  %v1814_v49 = vld [vmem:[%s2254_s7] sm:$0xff]  }
 0x48a   : > { %v1154_v51 = vpack.c.bf16 %v1153_v5, %v1152_v50  ;;  %v1815_v50 = vld [vmem:[%s2256_s9 + $0x18] sm:$0xff]  }
 0x48c   : > { %1745 = vmatmul.mubr.msk.bf16.vlgmr.msra.gmra.mxu1 %vm652_vm7, %v1154_v51 }
 0x48d   : > { %1760 = vmatprep.mubr.msk.bf16.mxu1 %vm1900_vm0, %v1899_v1 }
 0x4d5   : > { %v714_v52 = vpop.f32.mrf.mxu1 }
 0x4d7   : > { %v1710_v53 = vpop.f32.mrf.mxu1 }
 0x4d9   : > { %v717_v54 = vpop.f32.mrf.mxu1 }
 0x4db   : > { %v1711_v55 = vpop.f32.mrf.mxu1 }
 0x53c   : > { %v877_v56 = vpop.f32.mrf.mxu1 }
 0x53e   : > { %v1722_v57 = vpop.f32.mrf.mxu1 }
 0x540   : > { %v880_v58 = vpop.f32.mrf.mxu1 }
 0x541   : > { %v1792_v60 = vpack.i.bf16 %v880_v58, %v877_v56  ;;  %v1633_v58 = vld [vmem:[%s2252_s5] ss:$0 sm:$0xff] }
 0x542   : > { %v1723_v61 = vpop.f32.mrf.mxu1 }
 0x543   : > { %1793 = vrot.lane.b32.xlu1 %v1792_v60, %s1904_s29 }
 0x544   : > { %v1036_v62 = vpop.f32.mrf.mxu1 }
 0x546   : > { %v1734_v63 = vpop.f32.mrf.mxu1 }
 0x548   : > { %v1039_v2 = vpop.f32.mrf.mxu1 }
 0x549   : > { %v1797_v7 = vpack.i.bf16 %v1039_v2, %v1036_v62  ;;  %v1634_v62 = vld [vmem:[%s2253_s6] ss:$0 sm:$0xff] }
 0x54a   : > { %v1735_v8 = vpop.f32.mrf.mxu1 }
 0x54b   : > { %1798 = vrot.lane.b32.xlu0 %v1797_v7, %s1905_s16  ;;  %v1816_v8 = vld [vmem:[%s2256_s9 + $0x10] sm:$0xff]  }
 0x54c   : > { %v1195_v10 = vpop.f32.mrf.mxu1 }
 0x54e   : > { %v1746_v11 = vpop.f32.mrf.mxu1 }
 0x54f   : > { %v1818_v11 = vld [vmem:[%s2256_s9] sm:$0xff]  }
 0x550   : > { %v1198_v12 = vpop.f32.mrf.mxu1 }
 0x551   : > { %v1802_v14 = vpack.i.bf16 %v1198_v12, %v1195_v10  ;;  %v1817_v10 = vld [vmem:[%s2256_s9 + $0x8] sm:$0xff]   ;;  %v1635_v12 = vld [vmem:[%s2255_s8] ss:$0 sm:$0xff] }
 0x552   : > { %v1747_v15 = vpop.f32.mrf.mxu1 }
 0x553   : > { %1803 = vrot.lane.b32.xlu1 %v1802_v14, %s1906_s17 }
 0x5b5   : > { %v1794_v16 = vpop.permute.xlu1 %1793 }
 0x5b6   : > { %v1796_v18 = vunpack.i.h.bf16 %v1794_v16  ;;  %v1795_v19 = vunpack.i.l.bf16 %v1794_v16 }
 0x5b8   : > { %v1227_v23 = vsel %vm572_vm2, %v717_v54, %v1796_v18  ;;  %v1226_v24 = vsel %vm572_vm2, %v714_v52, %v1795_v19 }
 0x5bd   : > { %v1799_v17 = vpop.permute.xlu0 %1798 }
 0x5be   : > { %v1801_v20 = vunpack.i.h.bf16 %v1799_v17  ;;  %v1800_v21 = vunpack.i.l.bf16 %v1799_v17 }
 0x5c0   : > { %v1229_v28 = vsel %vm652_vm7, %v1227_v23, %v1801_v20  ;;  %v1228_v29 = vsel %vm652_vm7, %v1226_v24, %v1800_v21 }
 0x5c5   : > { %v1804_v22 = vpop.permute.xlu1 %1803 }
 0x5c6   : > { %v1806_v25 = vunpack.i.h.bf16 %v1804_v22  ;;  %v1805_v27 = vunpack.i.l.bf16 %v1804_v22 }
 0x5c8   : > { %v1232_v30 = vsel %vm1230_vm9, %v1229_v28, %v1806_v25  ;;  %v1231_v31 = vsel %vm1230_vm9, %v1228_v29, %v1805_v27 }
 0x5c9   : > { %v1233_v32 = vpack.c.bf16 %v1232_v30, %v1231_v31 }
 0x5cb   : > { %1753 = vmatmul.mubr.msk.bf16.vlgmr.msra.gmra.mxu0 %vm461_vm1, %v1233_v32 }
 0x5cc   : > { %1772 = vmatprep.mubr.msk.bf16.mxu0 %vm1900_vm0, %v1899_v1  ;;  %1765 = vmatpush3.bf16.msra.mxu0 %v1815_v50  ;;  %vm1458_vm0 = vcmask 523264  }
 0x5cd   : > { %1766 = vmatprep.subr.bf16.mxu0 %v1899_v1 }
 0x5d0   : > { %1767 = vmatpush3.bf16.msra.mxu0 %v1816_v8 }
 0x5d1   : > { %1768 = vmatprep.subr.bf16.mxu0 %v1899_v1 }
 0x5d4   : > { %1769 = vmatpush3.bf16.msra.mxu0 %v1817_v10 }
 0x5d5   : > { %1770 = vmatprep.subr.bf16.mxu0 %v1899_v1 }
 0x5d8   : > { %1771 = vmatpush3.bf16.msra.mxu0 %v1818_v11 }
 0x68b   : > { %v1294_v34 = vpop.f32.mrf.mxu0 }
 0x68c   : > { %v1295_v35 = vadd.f32 %v1629_v33, %v1294_v34 }
 0x68d   : > { %v1754_v36 = vpop.f32.mrf.mxu0 }
 0x68e   : > { %v1301_v13 = vadd.f32 %v1295_v35, %v2007_v3 }
 0x68f   : > { %v1297_v37 = vpop.f32.mrf.mxu0 }
 0x690   : > { %v1298_v38 = vadd.f32 %v1629_v33, %v1297_v37  ;;  %v1303_v39 = vsel %vm461_vm1, %v1301_v13, 0.0 }
 0x691   : > { %1304 = vadd.xlane.f32.xlu0 %v1303_v39  ;;  %v1755_v40 = vpop.f32.mrf.mxu0 }
 0x692   : > { %v1302_v41 = vadd.f32 %v1298_v38, %v2009_v4  ;;  %v1813_v4 = vld [vmem:[%s2254_s7 + $0x8] sm:$0xff]  }
 0x693   : > { %1757 = vmatpush3.bf16.msra.mxu1 %v1813_v4 }
 0x694   : > { %v1306_v42 = vsel %vm461_vm1, %v1302_v41, 0.0  ;;  %1758 = vmatprep.subr.bf16.mxu1 %v1899_v1  ;;  %v1639_v1 = vld [vmem:[%s2257_s10] ss:$0 sm:$0xff] }
 0x695   : > { %1307 = vadd.xlane.f32.xlu1 %v1306_v42 }
 0x697   : > { %1759 = vmatpush3.bf16.msra.mxu1 %v1814_v49 }
 0x71a   : > { %v1305_v43 = vpop.xlane.xlu0 %1304 }
 0x71b   : > { %v1310_v44 = vmul.f32 0.03125, %v1305_v43 }
 0x71d   : > { %v1312_v45 = vsub.f32 %v1301_v13, %v1310_v44 }
 0x71e   : > { %v1308_v46 = vpop.xlane.xlu1 %1307 }
 0x71f   : > { %v1311_v6 = vmul.f32 0.03125, %v1308_v46  ;;  %v1314_v9 = vmul.f32 %v1312_v45, %v1312_v45 }
 0x721   : > { %v1313_v26 = vsub.f32 %v1302_v41, %v1311_v6  ;;  %v1316_v3 = vsel %vm461_vm1, %v1314_v9, 0.0 }
 0x722   : > { %1317 = vadd.xlane.f32.xlu0 %v1316_v3  ;;  %v1645_v3 = vld [vmem:[%s2258_s11] ss:$0 sm:$0xff] }
 0x723   : > { %v1315_v47 = vmul.f32 %v1313_v26, %v1313_v26 }
 0x725   : > { %v1319_v48 = vsel %vm461_vm1, %v1315_v47, 0.0 }
 0x726   : > { %1320 = vadd.xlane.f32.xlu0 %v1319_v48  ;;  %v1646_v48 = vld [vmem:[%s2259_s12] ss:$0 sm:$0xff] }
 0x7ab   : > { %v1318_v5 = vpop.xlane.xlu0 %1317 }
 0x7ac   : > { %v1322_v51 = vmul.f32 0.03125, %v1318_v5 }
 0x7ae   : > { %v1324_v52 = vadd.f32 1e-05, %v1322_v51 }
 0x7af   : > { %v1321_v53 = vpop.xlane.xlu0 %1320 }
 0x7b0   : > { %1883 = vrsqrt.f32 %v1324_v52  ;;  %v1323_v54 = vmul.f32 0.03125, %v1321_v53 }
 0x7b2   : > { %v1325_v55 = vadd.f32 1e-05, %v1323_v54 }
 0x7b4   : > { %1885 = vrsqrt.f32 %v1325_v55 }
 0x7bd   : > { %v1884_v56 = vpop.eup %1883 }
 0x7be   : > { %v1328_v57 = vmul.f32 %v1884_v56, %v1312_v45 }
 0x7c0   : > { %v1337_v61 = vmul.f32 %v1633_v58, %v1328_v57 }
 0x7c1   : > { %v1886_v59 = vpop.eup %1885 }
 0x7c2   : > { %v1329_v60 = vmul.f32 %v1886_v59, %v1313_v26  ;;  %v1346_v0 = vadd.f32 %v1634_v62, %v1337_v61 }
 0x7c4   : > { %v1338_v63 = vmul.f32 %v1633_v58, %v1329_v60 }
 0x7c6   : > { %v1347_v2 = vadd.f32 %v1634_v62, %v1338_v63 }
 0x7c8   : > { %v1348_v7 = vpack.c.bf16 %v1347_v2, %v1346_v0 }
 0x7ca   : > { %1761 = vmatmul.mubr.msk.bf16.vlgmr.msra.gmra.mxu1 %vm461_vm1, %v1348_v7 }
 0x88a   : > { %v1409_v14 = vpop.f32.mrf.mxu1 }
 0x88b   : > { %v1410_v16 = vadd.f32 %v1635_v12, %v1409_v14 }
 0x88c   : > { %v1762_v15 = vpop.f32.mrf.mxu1 }
 0x88d   : > { %v1416_v20 = vmax.f32 %v1410_v16, 0.0 }
 0x88e   : > { %v1412_v17 = vpop.f32.mrf.mxu1 }
 0x88f   : > { %v1413_v18 = vadd.f32 %v1635_v12, %v1412_v17 }
 0x890   : > { %v1763_v19 = vpop.f32.mrf.mxu1 }
 0x891   : > { %v1417_v21 = vmax.f32 %v1413_v18, 0.0 }
 0x893   : > { %v1418_v22 = vpack.c.bf16 %v1417_v21, %v1416_v20 }
 0x895   : > { %1773 = vmatmul.mubr.msk.bf16.vlgmr.msra.gmra.mxu0 %vm1458_vm0, %v1418_v22 }
 0x955   : > { %v1496_v23 = vpop.f32.mrf.mxu0 }
 0x956   : > { %v1497_v24 = vadd.f32 %v1639_v1, %v1496_v23 }
 0x957   : > { %v1774_v25 = vpop.f32.mrf.mxu0 }
 0x958   : > { %v1503_v27 = vadd.f32 %v1497_v24, %v1346_v0 }
 0x959   : > { %v1499_v28 = vpop.f32.mrf.mxu0 }
 0x95a   : > { %v1500_v29 = vadd.f32 %v1639_v1, %v1499_v28  ;;  %v1505_v30 = vsel %vm461_vm1, %v1503_v27, 0.0 }
 0x95b   : > { %1506 = vadd.xlane.f32.xlu1 %v1505_v30  ;;  %v1775_v31 = vpop.f32.mrf.mxu0 }
 0x95c   : > { %v1504_v32 = vadd.f32 %v1500_v29, %v1347_v2 }
 0x95e   : > { %v1508_v33 = vsel %vm461_vm1, %v1504_v32, 0.0 }
 0x95f   : > { %1509 = vadd.xlane.f32.xlu0 %v1508_v33 }
 0x9e4   : > { %v1507_v34 = vpop.xlane.xlu1 %1506 }
 0x9e5   : > { %v1511_v35 = vmul.f32 0.03125, %v1507_v34 }
 0x9e7   : > { %v1513_v36 = vsub.f32 %v1503_v27, %v1511_v35 }
 0x9e8   : > { %v1510_v13 = vpop.xlane.xlu0 %1509 }
 0x9e9   : > { %v1512_v37 = vmul.f32 0.03125, %v1510_v13  ;;  %v1515_v38 = vmul.f32 %v1513_v36, %v1513_v36 }
 0x9eb   : > { %v1514_v39 = vsub.f32 %v1504_v32, %v1512_v37  ;;  %v1517_v40 = vsel %vm461_vm1, %v1515_v38, 0.0 }
 0x9ec   : > { %1518 = vadd.xlane.f32.xlu1 %v1517_v40 }
 0x9ed   : > { %v1516_v41 = vmul.f32 %v1514_v39, %v1514_v39 }
 0x9ef   : > { %v1520_v42 = vsel %vm461_vm1, %v1516_v41, 0.0 }
 0x9f0   : > { %1521 = vadd.xlane.f32.xlu0 %v1520_v42 }
 0xa75   : > { %v1519_v43 = vpop.xlane.xlu1 %1518 }
 0xa76   : > { %v1523_v44 = vmul.f32 0.03125, %v1519_v43 }
 0xa78   : > { %v1525_v45 = vadd.f32 1e-05, %v1523_v44 }
 0xa79   : > { %v1522_v46 = vpop.xlane.xlu0 %1521 }
 0xa7a   : > { %1887 = vrsqrt.f32 %v1525_v45  ;;  %v1524_v6 = vmul.f32 0.03125, %v1522_v46 }
 0xa7c   : > { %v1526_v9 = vadd.f32 1e-05, %v1524_v6 }
 0xa7e   : > { %1889 = vrsqrt.f32 %v1526_v9 }
 0xa87   : > { %v1888_v26 = vpop.eup %1887 }
 0xa88   : > { %v1529_v47 = vmul.f32 %v1888_v26, %v1513_v36 }
 0xa8a   : > { %v1538_v4 = vmul.f32 %v1645_v3, %v1529_v47 }
 0xa8b   : > { %v1890_v49 = vpop.eup %1889 }
 0xa8c   : > { %v1547_v50 = vadd.f32 %v1646_v48, %v1538_v4  ;;  %v1530_v5 = vmul.f32 %v1890_v49, %v1514_v39 }
 0xa8e   : > { %1549 = vst.msk [vmem:[%s440_s18] sm:$0xff] %vm461_vm1, %v1547_v50  ;;  %v1539_v51 = vmul.f32 %v1645_v3, %v1530_v5 }
 0xa90   : > { %v1548_v52 = vadd.f32 %v1646_v48, %v1539_v51 }
 0xa92   : > { %1550 = vst.msk [vmem:[%s440_s18 + $0x8] sm:$0xff] %vm461_vm1, %v1548_v52 }
 0xa93 PF: > { %s23_s25 = sadd.s32 1, %s1897_s25  }
 0xa94   : > { %p20_p4 = scmp.ge.s32.totalorder %s23_s25, 4  }
 0xa96   :  { %22 = sbr.rel (!%p20_p4) target bundleno = 1 (0x1), region = 102 }

</bundles_post_ra>
